<compile_context>
chip_gen: v7x
topology: tpu7x:2x2x1
jax: 0.10.0
libtpu: 0.0.40
codegen_flags: <defaults>
</compile_context>

<pallas_src>
import functools

import jax
import jax.numpy as jnp
from jax.experimental import pallas as pl
from jax.experimental.pallas import tpu as pltpu


def _round_up(v, m):
    return (v + m - 1) // m * m


def _deconv_bn_relu_kernel(x_ref, b_ref, shift_ref, o_ref, p_ref, *,
                           cin_p, k, wp, tm, kcore, kp, tr, num_row_tiles):
    """One grid step: one batch image (x one tile of TR output rows).

    x_ref:     (Cin_p, Lflat)   bf16  zero-dilated + padded input, channel-padded to
                                      the bf16 16-row sublane pack, spatially flattened
    b_ref:     (Cout, Kp)       bf16  flipped ConvT weights * BN scale, K = (kh, kw, ci_p)
    shift_ref: (Cout, 1)        f32   (conv_bias - running_mean) * scale + beta
    o_ref:     (Cout, TR*Wp)    out   full-width output tile (Wp->Wo slice done in wrapper)
    p_ref:     (Kp, TM)         bf16  scratch patch matrix, TM = TR*Wp
    """
    if num_row_tiles == 1:
        base = 0                                      # fully static offsets (common case)
    else:
        base = pl.multiple_of(pl.program_id(1) * (tr * wp), 128)

    # Zero the padded tail rows of the patch matrix once per step (0 * uninitialised
    # VMEM could be NaN).  kcore is a multiple of 16, so this is an aligned store.
    if kp > kcore:
        p_ref[kcore:kp, :] = jnp.zeros((kp - kcore, tm), dtype=p_ref.dtype)

    # Build the im2col patch matrix in VMEM from the k*k shifted windows of the
    # flattened input band.  cin_p is a multiple of 16 (bf16 sublane pack), so every
    # write is a full, sublane-aligned group store (no masked read-modify-write).
    for kh in range(k):
        for kw in range(k):
            j0 = (kh * k + kw) * cin_p
            off = kh * wp + kw
            p_ref[j0:j0 + cin_p, :] = x_ref[:, pl.ds(base + off, tm)]

    # (Cout, Kp) @ (Kp, TM) on the MXU, f32 accumulation.  BN scale folded into B;
    # epilogue (shift + ReLU + cast) fused directly into the single full-width,
    # lane-dense store.  Dropout2d(p=0.4) is identity in eval mode.
    acc = jnp.dot(b_ref[...], p_ref[...], preferred_element_type=jnp.float32)
    o_ref[...] = jnp.maximum(acc + shift_ref[...], 0.0).astype(o_ref.dtype)


@functools.partial(jax.jit,
                   static_argnames=("stride", "padding", "eps", "row_tile", "out_dtype"))
def upsampling_forward(x, w_t, b_conv, gamma, beta, run_mean, run_var,
                       *, stride=2, padding=2, eps=1e-5, row_tile=None,
                       out_dtype=jnp.bfloat16):
    """x: (N, Cin, H, W) NCHW.  w_t: (Cin, Cout, k, k) (PyTorch ConvTranspose2d layout)."""
    n, cin, h, w = x.shape
    _, cout, k, _ = w_t.shape
    ho = (h - 1) * stride - 2 * padding + k
    wo = (w - 1) * stride - 2 * padding + k
    pad_eff = k - 1 - padding
    assert pad_eff >= 0, "padding > k-1 not supported"
    hd, wd = (h - 1) * stride + 1, (w - 1) * stride + 1
    hp, wp = hd + 2 * pad_eff, wd + 2 * pad_eff          # == ho + k - 1, wo + k - 1

    tr = ho if row_tile is None else row_tile            # output rows per grid step
    assert ho % tr == 0 and (tr == ho or (tr * wp) % 128 == 0), \
        "row_tile must divide Ho and give a lane-aligned (tr*Wp) output block"
    n_rt = ho // tr
    tm = tr * wp                                         # matmul lane width (padded rows)

    cin_p = _round_up(cin, 16)                           # bf16 sublane pack = 16 rows
    kcore = cin_p * k * k                                # K, tap-group aligned
    kp = _round_up(kcore, 128)                           # pad reduction dim for the MXU
    lflat = _round_up(hp * wp + (k - 1), 128)            # flat input + tail so every
                                                         # pl.ds window stays in bounds

    # ---- cheap O(input)-sized prep in plain JAX (bf16 to halve HBM traffic) ----
    # zero-dilate (stride) + pad (k-1-padding) + channel-pad the input, flatten spatial.
    xp = jnp.zeros((n, cin_p, hp, wp), jnp.bfloat16)
    xp = xp.at[:, :cin, pad_eff:pad_eff + hd:stride,
                        pad_eff:pad_eff + wd:stride].set(x.astype(jnp.bfloat16))
    xpf = jnp.pad(xp.reshape(n, cin_p, hp * wp), ((0, 0), (0, 0), (0, lflat - hp * wp)))

    # Fold conv bias + BatchNorm (eval mode) into per-channel scale/shift; fold the
    # scale into the weight matrix so the kernel epilogue is shift + ReLU only.
    scale = gamma / jnp.sqrt(run_var + eps)                        # (Cout,)
    shift = ((b_conv - run_mean) * scale + beta).reshape(cout, 1)  # (Cout, 1) f32
    w_flip = w_t[:, :, ::-1, ::-1]                                 # (Cin, Cout, k, k)
    w_pad = jnp.zeros((k, k, cin_p, cout), w_t.dtype)
    w_pad = w_pad.at[:, :, :cin, :].set(w_flip.transpose(2, 3, 0, 1))
    bmat = w_pad.reshape(k * k * cin_p, cout).T                    # (Cout, kcore), K=(kh,kw,ci_p)
    bmat = (bmat * scale[:, None]).astype(jnp.bfloat16)
    bmat = jnp.pad(bmat, ((0, 0), (0, kp - kcore)))

    kernel = functools.partial(
        _deconv_bn_relu_kernel,
        cin_p=cin_p, k=k, wp=wp, tm=tm, kcore=kcore, kp=kp, tr=tr, num_row_tiles=n_rt)

    out_itemsize = jnp.dtype(out_dtype).itemsize

    # Derived VMEM budget: double-buffered blocks + single-buffered scratch, 3x margin
    # (layout/retile copies) + 4 MiB headroom, capped at v7x's 64 MiB physical VMEM.
    x_blk = cin_p * lflat * 2
    b_blk = cout * kp * 2
    s_blk = cout * 1 * 4
    o_blk = cout * tm * out_itemsize
    p_blk = kp * tm * 2
    vmem_needed = 2 * (x_blk + b_blk + s_blk + o_blk) + p_blk
    vmem_limit = min(_round_up(3 * vmem_needed, 1 << 20) + (4 << 20), 64 * 1024 * 1024)

    cost = pl.CostEstimate(
        flops=2 * n * cout * kp * ho * wp,
        transcendentals=0,
        bytes_accessed=(n * cin_p * lflat * 2 + cout * kp * 2 + cout * 4
                        + n * cout * ho * wp * out_itemsize),
    )

    if n_rt == 1:
        grid = (n,)
        x_map = lambda b: (b, 0, 0)
        w_map = lambda b: (0, 0)
        s_map = lambda b: (0, 0)
        o_map = lambda b: (b, 0, 0)
        dim_sem = ("parallel",)
    else:
        # TODO(synk): for large images, switch x to a row-band block (with halo) so
        # resident VMEM is O(tr*wp*cin_p), not O(hp*wp*cin_p) double-buffered.
        grid = (n, n_rt)
        x_map = lambda b, r: (b, 0, 0)
        w_map = lambda b, r: (0, 0)
        s_map = lambda b, r: (0, 0)
        o_map = lambda b, r: (b, 0, r)
        dim_sem = ("parallel", "parallel")

    out_flat = pl.pallas_call(
        kernel,
        out_shape=jax.ShapeDtypeStruct((n, cout, ho * wp), out_dtype),
        grid=grid,
        in_specs=[
            pl.BlockSpec((None, cin_p, lflat), x_map),
            pl.BlockSpec((cout, kp), w_map),
            pl.BlockSpec((cout, 1), s_map),
        ],
        out_specs=pl.BlockSpec((None, cout, tm), o_map),
        scratch_shapes=[pltpu.VMEM((kp, tm), jnp.bfloat16)],
        compiler_params=pltpu.CompilerParams(
            dimension_semantics=dim_sem,
            vmem_limit_bytes=vmem_limit,
        ),
        cost_estimate=cost,
    )(xpf, bmat, shift)

    # (N, Cout, Ho*Wp) -> (N, Cout, Ho, Wo): width compaction done here (XLA fuses the
    # slice); the kernel keeps a single full-width lane-dense store.
    return out_flat.reshape(n, cout, ho, wp)[..., :wo]


def _reference(x, w_t, b_conv, gamma, beta, run_mean, run_var, stride=2, padding=2, eps=1e-5):
    k = w_t.shape[2]
    pad = k - 1 - padding
    w_conv = jnp.flip(w_t, axis=(2, 3)).transpose(1, 0, 2, 3)  # (Cout, Cin, k, k)
    conv = jax.lax.conv_general_dilated(
        x, w_conv, window_strides=(1, 1),
        padding=[(pad, pad), (pad, pad)],
        lhs_dilation=(stride, stride),
        dimension_numbers=("NCHW", "OIHW", "NCHW"),
    ) + b_conv.reshape(1, -1, 1, 1)
    scale = (gamma / jnp.sqrt(run_var + eps)).reshape(1, -1, 1, 1)
    shift = (beta - run_mean * gamma / jnp.sqrt(run_var + eps)).reshape(1, -1, 1, 1)
    return jnp.maximum(conv * scale + shift, 0.0)


if __name__ == "__main__":
    key = jax.random.PRNGKey(0)
    k_x, k_w, k_b, k_g, k_be, k_m, k_v = jax.random.split(key, 7)

    N, Cin, Cout, H, W, K = 2, 4, 8, 16, 16, 5

    x = jax.random.normal(k_x, (N, Cin, H, W), dtype=jnp.float32)
    # PyTorch ConvTranspose2d weight shape: (in_channels, out_channels, kH, kW)
    w_t = 0.1 * jax.random.normal(k_w, (Cin, Cout, K, K), dtype=jnp.float32)
    b_conv = 0.1 * jax.random.normal(k_b, (Cout,), dtype=jnp.float32)
    gamma = jax.random.uniform(k_g, (Cout,), minval=0.5, maxval=1.5, dtype=jnp.float32)
    beta = 0.1 * jax.random.normal(k_be, (Cout,), dtype=jnp.float32)
    run_mean = 0.1 * jax.random.normal(k_m, (Cout,), dtype=jnp.float32)
    run_var = jax.random.uniform(k_v, (Cout,), minval=0.5, maxval=1.5, dtype=jnp.float32)

    out = upsampling_forward(x, w_t, b_conv, gamma, beta, run_mean, run_var)
    out = jax.block_until_ready(out)

    expected_shape = (N, Cout, (H - 1) * 2 - 2 * 2 + K, (W - 1) * 2 - 2 * 2 + K)
    assert out.shape == expected_shape, (out.shape, expected_shape)

    ref = _reference(x, w_t, b_conv, gamma, beta, run_mean, run_var)
    out_f32 = out.astype(jnp.float32)
    # bf16 inputs/weights/output with f32 accumulation -> loose tolerance (documented:
    # eval-mode inference precision, not bit-exact vs PyTorch f32).
    err = float(jnp.max(jnp.abs(out_f32 - ref)))
    assert jnp.allclose(out_f32, ref, rtol=5e-2, atol=5e-2), err

    print("KERNEL_OK")
</pallas_src>

<mosaic_0001>
module attributes {stable_mosaic.version = 11 : i64} {
  func.func @_deconv_bn_relu_kernel(%arg0: i32, %arg1: memref<1x16x1280xbf16, #tpu.memory_space<vmem>>, %arg2: memref<8x512xbf16, #tpu.memory_space<vmem>>, %arg3: memref<8x1xf32, #tpu.memory_space<vmem>>, %arg4: memref<1x8x1085xbf16, #tpu.memory_space<vmem>>, %arg5: memref<512x1085xbf16, #tpu.memory_space<vmem>>) attributes {dimension_semantics = [#tpu.dimension_semantics<parallel>], iteration_bounds = array<i64: 2>, scalar_prefetch = 0 : i64, scratch_operands = 1 : i64, tpu.core_type = #tpu.core_type<tc>, window_params = [{transform_indices = @transform_0, window_bounds = array<i64: 1, 16, 1280>}, {pipeline_mode = #tpu.pipeline_mode<synchronous>, transform_indices = @transform_1, window_bounds = array<i64: 8, 512>}, {pipeline_mode = #tpu.pipeline_mode<synchronous>, transform_indices = @transform_2, window_bounds = array<i64: 8, 1>}, {transform_indices = @transform_3, window_bounds = array<i64: 1, 8, 1085>}]} {
    %cst = arith.constant 0.000000e+00 : bf16
    %0 = vector.broadcast %cst : bf16 to vector<112x1085xbf16>
    %c400 = arith.constant 400 : index
    %c0 = arith.constant 0 : index
    %1 = vector.load %arg5[%c400, %c0] : memref<512x1085xbf16, #tpu.memory_space<vmem>>, vector<112x1085xbf16>
    tpu.vector_store %arg5[%c400, %c0], %0 {strides = array<i32>} : memref<512x1085xbf16, #tpu.memory_space<vmem>>, vector<112x1085xbf16>,
    %c0_0 = arith.constant 0 : index
    %c0_1 = arith.constant 0 : index
    %c0_2 = arith.constant 0 : index
    %2 = vector.load %arg1[%c0_0, %c0_1, %c0_2] : memref<1x16x1280xbf16, #tpu.memory_space<vmem>>, vector<1x16x1085xbf16>
    %3 = vector.shape_cast %2 : vector<1x16x1085xbf16> to vector<16x1085xbf16>
    %c0_3 = arith.constant 0 : index
    %c0_4 = arith.constant 0 : index
    %4 = vector.load %arg5[%c0_3, %c0_4] : memref<512x1085xbf16, #tpu.memory_space<vmem>>, vector<16x1085xbf16>
    tpu.vector_store %arg5[%c0_3, %c0_4], %3 {strides = array<i32>} : memref<512x1085xbf16, #tpu.memory_space<vmem>>, vector<16x1085xbf16>,
    %c0_5 = arith.constant 0 : index
    %c0_6 = arith.constant 0 : index
    %c1 = arith.constant 1 : index
    %5 = vector.load %arg1[%c0_5, %c0_6, %c1] : memref<1x16x1280xbf16, #tpu.memory_space<vmem>>, vector<1x16x1085xbf16>
    %6 = vector.shape_cast %5 : vector<1x16x1085xbf16> to vector<16x1085xbf16>
    %c16 = arith.constant 16 : index
    %c0_7 = arith.constant 0 : index
    %7 = vector.load %arg5[%c16, %c0_7] : memref<512x1085xbf16, #tpu.memory_space<vmem>>, vector<16x1085xbf16>
    tpu.vector_store %arg5[%c16, %c0_7], %6 {strides = array<i32>} : memref<512x1085xbf16, #tpu.memory_space<vmem>>, vector<16x1085xbf16>,
    %c0_8 = arith.constant 0 : index
    %c0_9 = arith.constant 0 : index
    %c2 = arith.constant 2 : index
    %8 = vector.load %arg1[%c0_8, %c0_9, %c2] : memref<1x16x1280xbf16, #tpu.memory_space<vmem>>, vector<1x16x1085xbf16>
    %9 = vector.shape_cast %8 : vector<1x16x1085xbf16> to vector<16x1085xbf16>
    %c32 = arith.constant 32 : index
    %c0_10 = arith.constant 0 : index
    %10 = vector.load %arg5[%c32, %c0_10] : memref<512x1085xbf16, #tpu.memory_space<vmem>>, vector<16x1085xbf16>
    tpu.vector_store %arg5[%c32, %c0_10], %9 {strides = array<i32>} : memref<512x1085xbf16, #tpu.memory_space<vmem>>, vector<16x1085xbf16>,
    %c0_11 = arith.constant 0 : index
    %c0_12 = arith.constant 0 : index
    %c3 = arith.constant 3 : index
    %11 = vector.load %arg1[%c0_11, %c0_12, %c3] : memref<1x16x1280xbf16, #tpu.memory_space<vmem>>, vector<1x16x1085xbf16>
    %12 = vector.shape_cast %11 : vector<1x16x1085xbf16> to vector<16x1085xbf16>
    %c48 = arith.constant 48 : index
    %c0_13 = arith.constant 0 : index
    %13 = vector.load %arg5[%c48, %c0_13] : memref<512x1085xbf16, #tpu.memory_space<vmem>>, vector<16x1085xbf16>
    tpu.vector_store %arg5[%c48, %c0_13], %12 {strides = array<i32>} : memref<512x1085xbf16, #tpu.memory_space<vmem>>, vector<16x1085xbf16>,
    %c0_14 = arith.constant 0 : index
    %c0_15 = arith.constant 0 : index
    %c4 = arith.constant 4 : index
    %14 = vector.load %arg1[%c0_14, %c0_15, %c4] : memref<1x16x1280xbf16, #tpu.memory_space<vmem>>, vector<1x16x1085xbf16>
    %15 = vector.shape_cast %14 : vector<1x16x1085xbf16> to vector<16x1085xbf16>
    %c64 = arith.constant 64 : index
    %c0_16 = arith.constant 0 : index
    %16 = vector.load %arg5[%c64, %c0_16] : memref<512x1085xbf16, #tpu.memory_space<vmem>>, vector<16x1085xbf16>
    tpu.vector_store %arg5[%c64, %c0_16], %15 {strides = array<i32>} : memref<512x1085xbf16, #tpu.memory_space<vmem>>, vector<16x1085xbf16>,
    %c0_17 = arith.constant 0 : index
    %c0_18 = arith.constant 0 : index
    %c35 = arith.constant 35 : index
    %17 = vector.load %arg1[%c0_17, %c0_18, %c35] : memref<1x16x1280xbf16, #tpu.memory_space<vmem>>, vector<1x16x1085xbf16>
    %18 = vector.shape_cast %17 : vector<1x16x1085xbf16> to vector<16x1085xbf16>
    %c80 = arith.constant 80 : index
    %c0_19 = arith.constant 0 : index
    %19 = vector.load %arg5[%c80, %c0_19] : memref<512x1085xbf16, #tpu.memory_space<vmem>>, vector<16x1085xbf16>
    tpu.vector_store %arg5[%c80, %c0_19], %18 {strides = array<i32>} : memref<512x1085xbf16, #tpu.memory_space<vmem>>, vector<16x1085xbf16>,
    %c0_20 = arith.constant 0 : index
    %c0_21 = arith.constant 0 : index
    %c36 = arith.constant 36 : index
    %20 = vector.load %arg1[%c0_20, %c0_21, %c36] : memref<1x16x1280xbf16, #tpu.memory_space<vmem>>, vector<1x16x1085xbf16>
    %21 = vector.shape_cast %20 : vector<1x16x1085xbf16> to vector<16x1085xbf16>
    %c96 = arith.constant 96 : index
    %c0_22 = arith.constant 0 : index
    %22 = vector.load %arg5[%c96, %c0_22] : memref<512x1085xbf16, #tpu.memory_space<vmem>>, vector<16x1085xbf16>
    tpu.vector_store %arg5[%c96, %c0_22], %21 {strides = array<i32>} : memref<512x1085xbf16, #tpu.memory_space<vmem>>, vector<16x1085xbf16>,
    %c0_23 = arith.constant 0 : index
    %c0_24 = arith.constant 0 : index
    %c37 = arith.constant 37 : index
    %23 = vector.load %arg1[%c0_23, %c0_24, %c37] : memref<1x16x1280xbf16, #tpu.memory_space<vmem>>, vector<1x16x1085xbf16>
    %24 = vector.shape_cast %23 : vector<1x16x1085xbf16> to vector<16x1085xbf16>
    %c112 = arith.constant 112 : index
    %c0_25 = arith.constant 0 : index
    %25 = vector.load %arg5[%c112, %c0_25] : memref<512x1085xbf16, #tpu.memory_space<vmem>>, vector<16x1085xbf16>
    tpu.vector_store %arg5[%c112, %c0_25], %24 {strides = array<i32>} : memref<512x1085xbf16, #tpu.memory_space<vmem>>, vector<16x1085xbf16>,
    %c0_26 = arith.constant 0 : index
    %c0_27 = arith.constant 0 : index
    %c38 = arith.constant 38 : index
    %26 = vector.load %arg1[%c0_26, %c0_27, %c38] : memref<1x16x1280xbf16, #tpu.memory_space<vmem>>, vector<1x16x1085xbf16>
    %27 = vector.shape_cast %26 : vector<1x16x1085xbf16> to vector<16x1085xbf16>
    %c128 = arith.constant 128 : index
    %c0_28 = arith.constant 0 : index
    %28 = vector.load %arg5[%c128, %c0_28] : memref<512x1085xbf16, #tpu.memory_space<vmem>>, vector<16x1085xbf16>
    tpu.vector_store %arg5[%c128, %c0_28], %27 {strides = array<i32>} : memref<512x1085xbf16, #tpu.memory_space<vmem>>, vector<16x1085xbf16>,
    %c0_29 = arith.constant 0 : index
    %c0_30 = arith.constant 0 : index
    %c39 = arith.constant 39 : index
    %29 = vector.load %arg1[%c0_29, %c0_30, %c39] : memref<1x16x1280xbf16, #tpu.memory_space<vmem>>, vector<1x16x1085xbf16>
    %30 = vector.shape_cast %29 : vector<1x16x1085xbf16> to vector<16x1085xbf16>
    %c144 = arith.constant 144 : index
    %c0_31 = arith.constant 0 : index
    %31 = vector.load %arg5[%c144, %c0_31] : memref<512x1085xbf16, #tpu.memory_space<vmem>>, vector<16x1085xbf16>
    tpu.vector_store %arg5[%c144, %c0_31], %30 {strides = array<i32>} : memref<512x1085xbf16, #tpu.memory_space<vmem>>, vector<16x1085xbf16>,
    %c0_32 = arith.constant 0 : index
    %c0_33 = arith.constant 0 : index
    %c70 = arith.constant 70 : index
    %32 = vector.load %arg1[%c0_32, %c0_33, %c70] : memref<1x16x1280xbf16, #tpu.memory_space<vmem>>, vector<1x16x1085xbf16>
    %33 = vector.shape_cast %32 : vector<1x16x1085xbf16> to vector<16x1085xbf16>
    %c160 = arith.constant 160 : index
    %c0_34 = arith.constant 0 : index
    %34 = vector.load %arg5[%c160, %c0_34] : memref<512x1085xbf16, #tpu.memory_space<vmem>>, vector<16x1085xbf16>
    tpu.vector_store %arg5[%c160, %c0_34], %33 {strides = array<i32>} : memref<512x1085xbf16, #tpu.memory_space<vmem>>, vector<16x1085xbf16>,
    %c0_35 = arith.constant 0 : index
    %c0_36 = arith.constant 0 : index
    %c71 = arith.constant 71 : index
    %35 = vector.load %arg1[%c0_35, %c0_36, %c71] : memref<1x16x1280xbf16, #tpu.memory_space<vmem>>, vector<1x16x1085xbf16>
    %36 = vector.shape_cast %35 : vector<1x16x1085xbf16> to vector<16x1085xbf16>
    %c176 = arith.constant 176 : index
    %c0_37 = arith.constant 0 : index
    %37 = vector.load %arg5[%c176, %c0_37] : memref<512x1085xbf16, #tpu.memory_space<vmem>>, vector<16x1085xbf16>
    tpu.vector_store %arg5[%c176, %c0_37], %36 {strides = array<i32>} : memref<512x1085xbf16, #tpu.memory_space<vmem>>, vector<16x1085xbf16>,
    %c0_38 = arith.constant 0 : index
    %c0_39 = arith.constant 0 : index
    %c72 = arith.constant 72 : index
    %38 = vector.load %arg1[%c0_38, %c0_39, %c72] : memref<1x16x1280xbf16, #tpu.memory_space<vmem>>, vector<1x16x1085xbf16>
    %39 = vector.shape_cast %38 : vector<1x16x1085xbf16> to vector<16x1085xbf16>
    %c192 = arith.constant 192 : index
    %c0_40 = arith.constant 0 : index
    %40 = vector.load %arg5[%c192, %c0_40] : memref<512x1085xbf16, #tpu.memory_space<vmem>>, vector<16x1085xbf16>
    tpu.vector_store %arg5[%c192, %c0_40], %39 {strides = array<i32>} : memref<512x1085xbf16, #tpu.memory_space<vmem>>, vector<16x1085xbf16>,
    %c0_41 = arith.constant 0 : index
    %c0_42 = arith.constant 0 : index
    %c73 = arith.constant 73 : index
    %41 = vector.load %arg1[%c0_41, %c0_42, %c73] : memref<1x16x1280xbf16, #tpu.memory_space<vmem>>, vector<1x16x1085xbf16>
    %42 = vector.shape_cast %41 : vector<1x16x1085xbf16> to vector<16x1085xbf16>
    %c208 = arith.constant 208 : index
    %c0_43 = arith.constant 0 : index
    %43 = vector.load %arg5[%c208, %c0_43] : memref<512x1085xbf16, #tpu.memory_space<vmem>>, vector<16x1085xbf16>
    tpu.vector_store %arg5[%c208, %c0_43], %42 {strides = array<i32>} : memref<512x1085xbf16, #tpu.memory_space<vmem>>, vector<16x1085xbf16>,
    %c0_44 = arith.constant 0 : index
    %c0_45 = arith.constant 0 : index
    %c74 = arith.constant 74 : index
    %44 = vector.load %arg1[%c0_44, %c0_45, %c74] : memref<1x16x1280xbf16, #tpu.memory_space<vmem>>, vector<1x16x1085xbf16>
    %45 = vector.shape_cast %44 : vector<1x16x1085xbf16> to vector<16x1085xbf16>
    %c224 = arith.constant 224 : index
    %c0_46 = arith.constant 0 : index
    %46 = vector.load %arg5[%c224, %c0_46] : memref<512x1085xbf16, #tpu.memory_space<vmem>>, vector<16x1085xbf16>
    tpu.vector_store %arg5[%c224, %c0_46], %45 {strides = array<i32>} : memref<512x1085xbf16, #tpu.memory_space<vmem>>, vector<16x1085xbf16>,
    %c0_47 = arith.constant 0 : index
    %c0_48 = arith.constant 0 : index
    %c105 = arith.constant 105 : index
    %47 = vector.load %arg1[%c0_47, %c0_48, %c105] : memref<1x16x1280xbf16, #tpu.memory_space<vmem>>, vector<1x16x1085xbf16>
    %48 = vector.shape_cast %47 : vector<1x16x1085xbf16> to vector<16x1085xbf16>
    %c240 = arith.constant 240 : index
    %c0_49 = arith.constant 0 : index
    %49 = vector.load %arg5[%c240, %c0_49] : memref<512x1085xbf16, #tpu.memory_space<vmem>>, vector<16x1085xbf16>
    tpu.vector_store %arg5[%c240, %c0_49], %48 {strides = array<i32>} : memref<512x1085xbf16, #tpu.memory_space<vmem>>, vector<16x1085xbf16>,
    %c0_50 = arith.constant 0 : index
    %c0_51 = arith.constant 0 : index
    %c106 = arith.constant 106 : index
    %50 = vector.load %arg1[%c0_50, %c0_51, %c106] : memref<1x16x1280xbf16, #tpu.memory_space<vmem>>, vector<1x16x1085xbf16>
    %51 = vector.shape_cast %50 : vector<1x16x1085xbf16> to vector<16x1085xbf16>
    %c256 = arith.constant 256 : index
    %c0_52 = arith.constant 0 : index
    %52 = vector.load %arg5[%c256, %c0_52] : memref<512x1085xbf16, #tpu.memory_space<vmem>>, vector<16x1085xbf16>
    tpu.vector_store %arg5[%c256, %c0_52], %51 {strides = array<i32>} : memref<512x1085xbf16, #tpu.memory_space<vmem>>, vector<16x1085xbf16>,
    %c0_53 = arith.constant 0 : index
    %c0_54 = arith.constant 0 : index
    %c107 = arith.constant 107 : index
    %53 = vector.load %arg1[%c0_53, %c0_54, %c107] : memref<1x16x1280xbf16, #tpu.memory_space<vmem>>, vector<1x16x1085xbf16>
    %54 = vector.shape_cast %53 : vector<1x16x1085xbf16> to vector<16x1085xbf16>
    %c272 = arith.constant 272 : index
    %c0_55 = arith.constant 0 : index
    %55 = vector.load %arg5[%c272, %c0_55] : memref<512x1085xbf16, #tpu.memory_space<vmem>>, vector<16x1085xbf16>
    tpu.vector_store %arg5[%c272, %c0_55], %54 {strides = array<i32>} : memref<512x1085xbf16, #tpu.memory_space<vmem>>, vector<16x1085xbf16>,
    %c0_56 = arith.constant 0 : index
    %c0_57 = arith.constant 0 : index
    %c108 = arith.constant 108 : index
    %56 = vector.load %arg1[%c0_56, %c0_57, %c108] : memref<1x16x1280xbf16, #tpu.memory_space<vmem>>, vector<1x16x1085xbf16>
    %57 = vector.shape_cast %56 : vector<1x16x1085xbf16> to vector<16x1085xbf16>
    %c288 = arith.constant 288 : index
    %c0_58 = arith.constant 0 : index
    %58 = vector.load %arg5[%c288, %c0_58] : memref<512x1085xbf16, #tpu.memory_space<vmem>>, vector<16x1085xbf16>
    tpu.vector_store %arg5[%c288, %c0_58], %57 {strides = array<i32>} : memref<512x1085xbf16, #tpu.memory_space<vmem>>, vector<16x1085xbf16>,
    %c0_59 = arith.constant 0 : index
    %c0_60 = arith.constant 0 : index
    %c109 = arith.constant 109 : index
    %59 = vector.load %arg1[%c0_59, %c0_60, %c109] : memref<1x16x1280xbf16, #tpu.memory_space<vmem>>, vector<1x16x1085xbf16>
    %60 = vector.shape_cast %59 : vector<1x16x1085xbf16> to vector<16x1085xbf16>
    %c304 = arith.constant 304 : index
    %c0_61 = arith.constant 0 : index
    %61 = vector.load %arg5[%c304, %c0_61] : memref<512x1085xbf16, #tpu.memory_space<vmem>>, vector<16x1085xbf16>
    tpu.vector_store %arg5[%c304, %c0_61], %60 {strides = array<i32>} : memref<512x1085xbf16, #tpu.memory_space<vmem>>, vector<16x1085xbf16>,
    %c0_62 = arith.constant 0 : index
    %c0_63 = arith.constant 0 : index
    %c140 = arith.constant 140 : index
    %62 = vector.load %arg1[%c0_62, %c0_63, %c140] : memref<1x16x1280xbf16, #tpu.memory_space<vmem>>, vector<1x16x1085xbf16>
    %63 = vector.shape_cast %62 : vector<1x16x1085xbf16> to vector<16x1085xbf16>
    %c320 = arith.constant 320 : index
    %c0_64 = arith.constant 0 : index
    %64 = vector.load %arg5[%c320, %c0_64] : memref<512x1085xbf16, #tpu.memory_space<vmem>>, vector<16x1085xbf16>
    tpu.vector_store %arg5[%c320, %c0_64], %63 {strides = array<i32>} : memref<512x1085xbf16, #tpu.memory_space<vmem>>, vector<16x1085xbf16>,
    %c0_65 = arith.constant 0 : index
    %c0_66 = arith.constant 0 : index
    %c141 = arith.constant 141 : index
    %65 = vector.load %arg1[%c0_65, %c0_66, %c141] : memref<1x16x1280xbf16, #tpu.memory_space<vmem>>, vector<1x16x1085xbf16>
    %66 = vector.shape_cast %65 : vector<1x16x1085xbf16> to vector<16x1085xbf16>
    %c336 = arith.constant 336 : index
    %c0_67 = arith.constant 0 : index
    %67 = vector.load %arg5[%c336, %c0_67] : memref<512x1085xbf16, #tpu.memory_space<vmem>>, vector<16x1085xbf16>
    tpu.vector_store %arg5[%c336, %c0_67], %66 {strides = array<i32>} : memref<512x1085xbf16, #tpu.memory_space<vmem>>, vector<16x1085xbf16>,
    %c0_68 = arith.constant 0 : index
    %c0_69 = arith.constant 0 : index
    %c142 = arith.constant 142 : index
    %68 = vector.load %arg1[%c0_68, %c0_69, %c142] : memref<1x16x1280xbf16, #tpu.memory_space<vmem>>, vector<1x16x1085xbf16>
    %69 = vector.shape_cast %68 : vector<1x16x1085xbf16> to vector<16x1085xbf16>
    %c352 = arith.constant 352 : index
    %c0_70 = arith.constant 0 : index
    %70 = vector.load %arg5[%c352, %c0_70] : memref<512x1085xbf16, #tpu.memory_space<vmem>>, vector<16x1085xbf16>
    tpu.vector_store %arg5[%c352, %c0_70], %69 {strides = array<i32>} : memref<512x1085xbf16, #tpu.memory_space<vmem>>, vector<16x1085xbf16>,
    %c0_71 = arith.constant 0 : index
    %c0_72 = arith.constant 0 : index
    %c143 = arith.constant 143 : index
    %71 = vector.load %arg1[%c0_71, %c0_72, %c143] : memref<1x16x1280xbf16, #tpu.memory_space<vmem>>, vector<1x16x1085xbf16>
    %72 = vector.shape_cast %71 : vector<1x16x1085xbf16> to vector<16x1085xbf16>
    %c368 = arith.constant 368 : index
    %c0_73 = arith.constant 0 : index
    %73 = vector.load %arg5[%c368, %c0_73] : memref<512x1085xbf16, #tpu.memory_space<vmem>>, vector<16x1085xbf16>
    tpu.vector_store %arg5[%c368, %c0_73], %72 {strides = array<i32>} : memref<512x1085xbf16, #tpu.memory_space<vmem>>, vector<16x1085xbf16>,
    %c0_74 = arith.constant 0 : index
    %c0_75 = arith.constant 0 : index
    %c144_76 = arith.constant 144 : index
    %74 = vector.load %arg1[%c0_74, %c0_75, %c144_76] : memref<1x16x1280xbf16, #tpu.memory_space<vmem>>, vector<1x16x1085xbf16>
    %75 = vector.shape_cast %74 : vector<1x16x1085xbf16> to vector<16x1085xbf16>
    %c384 = arith.constant 384 : index
    %c0_77 = arith.constant 0 : index
    %76 = vector.load %arg5[%c384, %c0_77] : memref<512x1085xbf16, #tpu.memory_space<vmem>>, vector<16x1085xbf16>
    tpu.vector_store %arg5[%c384, %c0_77], %75 {strides = array<i32>} : memref<512x1085xbf16, #tpu.memory_space<vmem>>, vector<16x1085xbf16>,
    %c0_78 = arith.constant 0 : index
    %c0_79 = arith.constant 0 : index
    %77 = vector.load %arg2[%c0_78, %c0_79] : memref<8x512xbf16, #tpu.memory_space<vmem>>, vector<8x512xbf16>
    %c0_80 = arith.constant 0 : index
    %c0_81 = arith.constant 0 : index
    %78 = vector.load %arg5[%c0_80, %c0_81] : memref<512x1085xbf16, #tpu.memory_space<vmem>>, vector<512x1085xbf16>
    %cst_82 = arith.constant dense<0.000000e+00> : vector<8x1085xf32>
    %79 = tpu.matmul %77, %78, %cst_82 {dimension_numbers = #tpu.dot_dimension_numbers<[1], [0], [0], [1], [0, 0, 1, 1], [], []>} : vector<8x512xbf16>, vector<512x1085xbf16>, vector<8x1085xf32> -> vector<8x1085xf32>
    %c0_83 = arith.constant 0 : index
    %c0_84 = arith.constant 0 : index
    %80 = vector.load %arg3[%c0_83, %c0_84] : memref<8x1xf32, #tpu.memory_space<vmem>>, vector<8x1xf32>
    %81 = vector.broadcast %80 : vector<8x1xf32> to vector<8x1085xf32>
    %82 = arith.addf %79, %81 : vector<8x1085xf32>
    %cst_85 = arith.constant 0.000000e+00 : f32
    %83 = vector.broadcast %cst_85 : f32 to vector<8x1085xf32>
    %84 = arith.maximumf %82, %83 : vector<8x1085xf32>
    %85 = arith.truncf %84 : vector<8x1085xf32> to vector<8x1085xbf16>
    %c0_86 = arith.constant 0 : index
    %c0_87 = arith.constant 0 : index
    %c0_88 = arith.constant 0 : index
    %86 = vector.load %arg4[%c0_86, %c0_87, %c0_88] : memref<1x8x1085xbf16, #tpu.memory_space<vmem>>, vector<1x8x1085xbf16>
    %87 = vector.shape_cast %86 : vector<1x8x1085xbf16> to vector<8x1085xbf16>
    %88 = vector.shape_cast %85 : vector<8x1085xbf16> to vector<1x8x1085xbf16>
    tpu.vector_store %arg4[%c0_86, %c0_87, %c0_88], %88 {strides = array<i32>} : memref<1x8x1085xbf16, #tpu.memory_space<vmem>>, vector<1x8x1085xbf16>,
    return
  }
  func.func @transform_0(%arg0: i32) -> (i32, i32, i32) {
    %c0_i32 = arith.constant 0 : i32
    %c0_i32_0 = arith.constant 0 : i32
    %c0_i32_1 = arith.constant 0 : i32
    return %arg0, %c0_i32, %c0_i32_0 : i32, i32, i32
  }
  func.func @transform_1(%arg0: i32) -> (i32, i32) {
    %c0_i32 = arith.constant 0 : i32
    %c0_i32_0 = arith.constant 0 : i32
    %c0_i32_1 = arith.constant 0 : i32
    return %c0_i32, %c0_i32_0 : i32, i32
  }
  func.func @transform_2(%arg0: i32) -> (i32, i32) {
    %c0_i32 = arith.constant 0 : i32
    %c0_i32_0 = arith.constant 0 : i32
    %c0_i32_1 = arith.constant 0 : i32
    return %c0_i32, %c0_i32_0 : i32, i32
  }
  func.func @transform_3(%arg0: i32) -> (i32, i32, i32) {
    %c0_i32 = arith.constant 0 : i32
    %c0_i32_0 = arith.constant 0 : i32
    %c0_i32_1 = arith.constant 0 : i32
    return %arg0, %c0_i32, %c0_i32_0 : i32, i32, i32
  }
}

</mosaic_0001>

<bundles_post_ra>
// kernel: upsampling_forward.1
= control target key start
LH: loop header
LB: loop body
LE: loop exit
PB: predicated region body
PF: predicated region fallthrough
CT: control target
= control target key end

     0   :  { %s3860_s12 = smov 0   ;;  %s4934_s0 = inlined_call_operand.vmem [shape: bf16[2,16,1280], index: 0, kind: input, shape index: {}]   ;;  %s4935_s1 = inlined_call_operand.vmem [shape: bf16[8,512], index: 1, kind: input, shape index: {}]   ;;  %s4936_s2 = inlined_call_operand.vmem [shape: f32[8,1], index: 2, kind: input, shape index: {}]   ;;  %s4937_s3 = inlined_call_operand.vmem [shape: bf16[2,8,1085], index: 3, kind: output, shape index: {}]  }
   0x1 LB: > { %s3394_s13 = sadd.s32 4294967295, %s3813_s12   ;;  %p3398_p0 = scmp.ge.s32.totalorder %s3813_s12, 1  ;;  %s3813_s12 = sphi %s3860_s12, %s13_s12  }
   0x2   : > { %p137_p1 = scmp.lt.s32.totalorder %s3813_s12, 3 }
   0x4   : > { %p138_p2 = pnand %p3398_p0, %p137_p1 }
   0x5   : > { %p161_p3 = scmp.lt.s32.totalorder (!%p138_p2), %s3394_s13, 1  ;;  %s3815_s18 = smov (!%p138_p2), 127   ;;  %vm366_vm0 = vcmask (!%p138_p2), 1039360   ;;  %vm458_vm1 = vcmask (!%p138_p2), 1031168   ;;  %vm550_vm2 = vcmask (!%p138_p2), 1022976   ;;  %v4053_v27 = vld [vmem:[%s4935_s1] sm:$0xff] (!%p138_p2) }
   0x6   : > { %141 = sbr.rel (%p138_p2) target bundleno = 849 (0x351), region = 32  ;;  %s3816_s19 = smov (!%p138_p2), 126   ;;  %v4058_v30 = vcombine.high (!%p138_p2), %v4053_v27, %v4053_v27  ;;  %vm642_vm3 = vcmask (!%p138_p2), 1014784   ;;  %vm734_vm4 = vcmask (!%p138_p2), 760832   ;;  %vm826_vm5 = vcmask (!%p138_p2), 752640  }
   0x7   : > { %s3817_s20 = smov (!%p138_p2), 125   ;;  %s3818_s21 = smov (!%p138_p2), 124   ;;  %vm918_vm6 = vcmask (!%p138_p2), 744448   ;;  %vm1010_vm7 = vcmask (!%p138_p2), 736256   ;;  %vm1102_vm8 = vcmask (!%p138_p2), 728064   ;;  %vm1199_vm9 = vcmask (!%p138_p2), 474112  }
   0x8   : > { %s3819_s22 = smov (!%p138_p2), 93   ;;  %s3820_s23 = smov (!%p138_p2), 92   ;;  %2911 = vmatprep.mubr.bf16.mxu0 (!%p138_p2), %v4058_v30  ;;  %2993 = vmatprep.mubr.bf16.mxu1 (!%p138_p2), %v4058_v30  ;;  %vm1297_vm10 = vcmask (!%p138_p2), 465920   ;;  %vm1395_vm11 = vcmask (!%p138_p2), 457728   ;;  %vm180_vm12 = vcmask (!%p138_p2), 498688   ;;  %vm1493_vm13 = vcmask (!%p138_p2), 449536  }
   0x9   : > { %s3821_s24 = smov (!%p138_p2), 91   ;;  %s3822_s25 = smov (!%p138_p2), 90   ;;  %vm4938_vm14 = vcmask (!%p138_p2), 441344   ;;  %vm4939_vm15 = vcmask (!%p138_p2), 187392  }
   0xa   : > { %s3823_s26 = smov (!%p138_p2), 89   ;;  %s3824_s27 = smov (!%p138_p2), 58  }
   0xb   : > { %s3825_s28 = smov (!%p138_p2), 57   ;;  %s3826_s29 = smov (!%p138_p2), 56  }
   0xc   : > { %s3827_s30 = smov (!%p138_p2), 55   ;;  %s3828_s4 = smov (!%p138_p2), 54  }
   0xd   : > { %s4990_s13 = smov (!%p161_p3, %s3394_s13), 1  ;;  %s3829_s7 = smov 23  }
   0xe   : > { %s3720_s14 = smul.u32 80, %s4990_s13  ;;  %s3830_s8 = smov 22  }
   0xf   : > { %s3831_s9 = smov 21   ;;  %s3832_s10 = smov 20  }
  0x10   : > { %s3874_s17 = scalar_lea.vmem %s4934_s0, %s3720_s14  ;;  %s3833_s11 = smov 19  }
  0x11   : > { %v3877_v0 = vld [vmem:[%s3874_s17 + $0x4] ss:$40 sps:$4 sm:$0xff]   ;;  %v3880_v1 = vld [vmem:[%s3874_s17] ss:$40 sps:$4 sm:$0xff]   ;;  %v3895_v4 = vld [vmem:[%s3874_s17 + $0x10] ss:$40 sps:$4 sm:$0xff]  }
  0x12   : > { %350 = vrot.lane.b32.xlu0 %v3877_v0, %s3815_s18  ;;  %v3885_v2 = vld [vmem:[%s3874_s17 + $0x8] ss:$40 sps:$4 sm:$0xff]   ;;  %v3888_v3 = vld [vmem:[%s3874_s17 + $0xc] ss:$40 sps:$4 sm:$0xff]   ;;  %2879 = vmatprep.subr.bf16.mxu0 %v3877_v0  ;;  %s3834_s14 = smov 116   ;;  %s3835_s15 = smov 115  }
  0x13   : > { %348 = vrot.lane.b32.xlu1 %v3880_v1, %s3815_s18  ;;  %2880 = vmatpush1.bf16.msra.mxu0 %v3880_v1  ;;  %s3836_s16 = smov 114   ;;  %s3837_s5 = smov 113  }
  0x14   : > { %2961 = vmatprep.subr.bf16.mxu1 %v3888_v3  ;;  %s3839_s6 = smov 112  }
  0x15   : > { %2962 = vmatpush1.bf16.msra.mxu1 %v3885_v2 }
  0x16   : > { %352 = vrot.lane.b32.xlu0 %v3885_v2, %s3815_s18 }
  0x17   : > { %354 = vrot.lane.b32.xlu1 %v3888_v3, %s3815_s18 }
  0x1a   : > { %356 = vrot.lane.b32.xlu0 %v3895_v4, %s3815_s18 }
  0x1b   : > { %442 = vrot.lane.b32.xlu1 %v3877_v0, %s3816_s19 }
  0x1e   : > { %444 = vrot.lane.b32.xlu0 %v3885_v2, %s3816_s19 }
  0x1f   : > { %440 = vrot.lane.b32.xlu1 %v3880_v1, %s3816_s19 }
  0x22   : > { %446 = vrot.lane.b32.xlu0 %v3888_v3, %s3816_s19 }
  0x23   : > { %448 = vrot.lane.b32.xlu1 %v3895_v4, %s3816_s19 }
  0x26   : > { %534 = vrot.lane.b32.xlu0 %v3877_v0, %s3817_s20 }
  0x27   : > { %536 = vrot.lane.b32.xlu1 %v3885_v2, %s3817_s20 }
  0x2a   : > { %532 = vrot.lane.b32.xlu0 %v3880_v1, %s3817_s20 }
  0x2b   : > { %538 = vrot.lane.b32.xlu1 %v3888_v3, %s3817_s20 }
  0x2e   : > { %540 = vrot.lane.b32.xlu0 %v3895_v4, %s3817_s20 }
  0x2f   : > { %626 = vrot.lane.b32.xlu1 %v3877_v0, %s3818_s21 }
  0x32   : > { %628 = vrot.lane.b32.xlu0 %v3885_v2, %s3818_s21 }
  0x33   : > { %624 = vrot.lane.b32.xlu1 %v3880_v1, %s3818_s21 }
  0x36   : > { %630 = vrot.lane.b32.xlu0 %v3888_v3, %s3818_s21 }
  0x37   : > { %632 = vrot.lane.b32.xlu1 %v3895_v4, %s3818_s21 }
  0x3a   : > { %718 = vrot.lane.b32.xlu0 %v3877_v0, %s3819_s22 }
  0x3b   : > { %720 = vrot.lane.b32.xlu1 %v3885_v2, %s3819_s22 }
  0x3e   : > { %716 = vrot.lane.b32.xlu0 %v3880_v1, %s3819_s22 }
  0x3f   : > { %722 = vrot.lane.b32.xlu1 %v3888_v3, %s3819_s22 }
  0x42   : > { %724 = vrot.lane.b32.xlu0 %v3895_v4, %s3819_s22 }
  0x43   : > { %810 = vrot.lane.b32.xlu1 %v3877_v0, %s3820_s23 }
  0x46   : > { %812 = vrot.lane.b32.xlu0 %v3885_v2, %s3820_s23 }
  0x47   : > { %808 = vrot.lane.b32.xlu1 %v3880_v1, %s3820_s23 }
  0x4a   : > { %814 = vrot.lane.b32.xlu0 %v3888_v3, %s3820_s23 }
  0x4b   : > { %816 = vrot.lane.b32.xlu1 %v3895_v4, %s3820_s23 }
  0x4e   : > { %902 = vrot.lane.b32.xlu0 %v3877_v0, %s3821_s24 }
  0x4f   : > { %904 = vrot.lane.b32.xlu1 %v3885_v2, %s3821_s24 }
  0x52   : > { %900 = vrot.lane.b32.xlu0 %v3880_v1, %s3821_s24 }
  0x53   : > { %906 = vrot.lane.b32.xlu1 %v3888_v3, %s3821_s24 }
  0x56   : > { %908 = vrot.lane.b32.xlu0 %v3895_v4, %s3821_s24 }
  0x57   : > { %994 = vrot.lane.b32.xlu1 %v3877_v0, %s3822_s25 }
  0x5a   : > { %996 = vrot.lane.b32.xlu0 %v3885_v2, %s3822_s25 }
  0x5b   : > { %992 = vrot.lane.b32.xlu1 %v3880_v1, %s3822_s25 }
  0x5e   : > { %998 = vrot.lane.b32.xlu0 %v3888_v3, %s3822_s25 }
  0x5f   : > { %1000 = vrot.lane.b32.xlu1 %v3895_v4, %s3822_s25 }
  0x62   : > { %1086 = vrot.lane.b32.xlu0 %v3877_v0, %s3823_s26 }
  0x63   : > { %1088 = vrot.lane.b32.xlu1 %v3885_v2, %s3823_s26 }
  0x66   : > { %1084 = vrot.lane.b32.xlu0 %v3880_v1, %s3823_s26 }
  0x67   : > { %1090 = vrot.lane.b32.xlu1 %v3888_v3, %s3823_s26 }
  0x6a   : > { %1092 = vrot.lane.b32.xlu0 %v3895_v4, %s3823_s26 }
  0x6b   : > { %1181 = vrot.lane.b32.xlu1 %v3877_v0, %s3824_s27 }
  0x6e   : > { %1183 = vrot.lane.b32.xlu0 %v3885_v2, %s3824_s27 }
  0x6f   : > { %1179 = vrot.lane.b32.xlu1 %v3880_v1, %s3824_s27 }
  0x72   : > { %1185 = vrot.lane.b32.xlu0 %v3888_v3, %s3824_s27 }
  0x73   : > { %1187 = vrot.lane.b32.xlu1 %v3895_v4, %s3824_s27 }
  0x76   : > { %1279 = vrot.lane.b32.xlu0 %v3877_v0, %s3825_s28 }
  0x77   : > { %1281 = vrot.lane.b32.xlu1 %v3885_v2, %s3825_s28 }
  0x7a   : > { %1277 = vrot.lane.b32.xlu0 %v3880_v1, %s3825_s28 }
  0x7b   : > { %1283 = vrot.lane.b32.xlu1 %v3888_v3, %s3825_s28 }
  0x7e   : > { %1285 = vrot.lane.b32.xlu0 %v3895_v4, %s3825_s28 }
  0x7f   : > { %1377 = vrot.lane.b32.xlu1 %v3877_v0, %s3826_s29 }
  0x82   : > { %1379 = vrot.lane.b32.xlu0 %v3885_v2, %s3826_s29 }
  0x83   : > { %1375 = vrot.lane.b32.xlu1 %v3880_v1, %s3826_s29 }
  0x84   : > { %v351_v5 = vpop.permute.xlu0 %350 }
  0x85   : > { %v349_v6 = vpop.permute.xlu1 %348 }
  0x86   : > { %v367_v7 = vsel %vm366_vm0, %v349_v6, %v351_v5  ;;  %1381 = vrot.lane.b32.xlu0 %v3888_v3, %s3826_s29 }
  0x87   : > { %1383 = vrot.lane.b32.xlu1 %v3895_v4, %s3826_s29 }
  0x88   : > { %v353_v8 = vpop.permute.xlu0 %352 }
  0x89   : > { %v368_v9 = vsel %vm366_vm0, %v351_v5, %v353_v8  ;;  %v355_v10 = vpop.permute.xlu1 %354 }
  0x8a   : > { %v369_v11 = vsel %vm366_vm0, %v353_v8, %v355_v10  ;;  %1475 = vrot.lane.b32.xlu0 %v3877_v0, %s3827_s30  ;;  %2881 = vmatprep.subr.bf16.mxu0 %v368_v9 }
  0x8b   : > { %1477 = vrot.lane.b32.xlu1 %v3885_v2, %s3827_s30  ;;  %2882 = vmatpush1.bf16.msra.mxu0 %v367_v7 }
  0x8c   : > { %v4022_v12 = vpop.permute.xlu0 %356 }
  0x8d   : > { %v370_v13 = vsel %vm366_vm0, %v355_v10, %v4022_v12  ;;  %v443_v14 = vpop.permute.xlu1 %442 }
  0x8e   : > { %1473 = vrot.lane.b32.xlu0 %v3880_v1, %s3827_s30  ;;  %2963 = vmatprep.subr.bf16.mxu1 %v370_v13 }
  0x8f   : > { %1479 = vrot.lane.b32.xlu1 %v3888_v3, %s3827_s30  ;;  %2964 = vmatpush1.bf16.msra.mxu1 %v369_v11 }
  0x90   : > { %v445_v15 = vpop.permute.xlu0 %444 }
  0x91   : > { %v460_v16 = vsel %vm458_vm1, %v443_v14, %v445_v15  ;;  %v441_v17 = vpop.permute.xlu1 %440 }
  0x92   : > { %v459_v18 = vsel %vm458_vm1, %v441_v17, %v443_v14  ;;  %1481 = vrot.lane.b32.xlu0 %v3895_v4, %s3827_s30  ;;  %2883 = vmatprep.subr.bf16.mxu0 %v460_v16 }
  0x93   : > { %1573 = vrot.lane.b32.xlu1 %v3877_v0, %s3828_s4  ;;  %2884 = vmatpush1.bf16.msra.mxu0 %v459_v18 }
  0x94   : > { %v447_v19 = vpop.permute.xlu0 %446 }
  0x95   : > { %v461_v20 = vsel %vm458_vm1, %v445_v15, %v447_v19  ;;  %v4037_v21 = vpop.permute.xlu1 %448 }
  0x96   : > { %v462_v22 = vsel %vm458_vm1, %v447_v19, %v4037_v21  ;;  %1575 = vrot.lane.b32.xlu0 %v3885_v2, %s3828_s4 }
  0x97   : > { %1571 = vrot.lane.b32.xlu1 %v3880_v1, %s3828_s4  ;;  %2965 = vmatprep.subr.bf16.mxu1 %v462_v22 }
  0x98   : > { %v535_v23 = vpop.permute.xlu0 %534  ;;  %2966 = vmatpush1.bf16.msra.mxu1 %v461_v20  ;;  %v4164_v20 = vld [vmem:[%s3874_s17 + $0x10] ss:$40 sps:$4 sm:$0xff]  }
  0x99   : > { %v537_v24 = vpop.permute.xlu1 %536 }
  0x9a   : > { %v552_v25 = vsel %vm550_vm2, %v535_v23, %v537_v24  ;;  %1577 = vrot.lane.b32.xlu0 %v3888_v3, %s3828_s4 }
  0x9b   : > { %1579 = vrot.lane.b32.xlu1 %v3895_v4, %s3828_s4  ;;  %2885 = vmatprep.subr.bf16.mxu0 %v552_v25 }
  0x9c   : > { %v533_v26 = vpop.permute.xlu0 %532 }
  0x9d   : > { %v551_v28 = vsel %vm550_vm2, %v533_v26, %v535_v23  ;;  %v539_v29 = vpop.permute.xlu1 %538 }
  0x9e   : > { %v553_v31 = vsel %vm550_vm2, %v537_v24, %v539_v29  ;;  %1671 = vrot.lane.b32.xlu0 %v3877_v0, %s3829_s7  ;;  %2886 = vmatpush1.bf16.msra.mxu0 %v551_v28 }
  0x9f   : > { %1673 = vrot.lane.b32.xlu1 %v3885_v2, %s3829_s7 }
  0xa0   : > { %v4066_v32 = vpop.permute.xlu0 %540 }
  0xa1   : > { %v554_v33 = vsel %vm550_vm2, %v539_v29, %v4066_v32  ;;  %v627_v34 = vpop.permute.xlu1 %626 }
  0xa2   : > { %1669 = vrot.lane.b32.xlu0 %v3880_v1, %s3829_s7  ;;  %2967 = vmatprep.subr.bf16.mxu1 %v554_v33 }
  0xa3   : > { %1675 = vrot.lane.b32.xlu1 %v3888_v3, %s3829_s7  ;;  %2968 = vmatpush1.bf16.msra.mxu1 %v553_v31 }
  0xa4   : > { %v629_v35 = vpop.permute.xlu0 %628 }
  0xa5   : > { %v644_v36 = vsel %vm642_vm3, %v627_v34, %v629_v35  ;;  %v625_v37 = vpop.permute.xlu1 %624 }
  0xa6   : > { %v643_v38 = vsel %vm642_vm3, %v625_v37, %v627_v34  ;;  %1677 = vrot.lane.b32.xlu0 %v3895_v4, %s3829_s7  ;;  %2887 = vmatprep.subr.bf16.mxu0 %v644_v36 }
  0xa7   : > { %1769 = vrot.lane.b32.xlu1 %v3877_v0, %s3830_s8  ;;  %2888 = vmatpush1.bf16.msra.mxu0 %v643_v38 }
  0xa8   : > { %v631_v39 = vpop.permute.xlu0 %630 }
  0xa9   : > { %v645_v40 = vsel %vm642_vm3, %v629_v35, %v631_v39  ;;  %v4082_v41 = vpop.permute.xlu1 %632 }
  0xaa   : > { %v646_v42 = vsel %vm642_vm3, %v631_v39, %v4082_v41  ;;  %1771 = vrot.lane.b32.xlu0 %v3885_v2, %s3830_s8 }
  0xab   : > { %1767 = vrot.lane.b32.xlu1 %v3880_v1, %s3830_s8  ;;  %2969 = vmatprep.subr.bf16.mxu1 %v646_v42 }
  0xac   : > { %v719_v43 = vpop.permute.xlu0 %718  ;;  %2970 = vmatpush1.bf16.msra.mxu1 %v645_v40 }
  0xad   : > { %v721_v44 = vpop.permute.xlu1 %720 }
  0xae   : > { %v736_v45 = vsel %vm734_vm4, %v719_v43, %v721_v44  ;;  %1773 = vrot.lane.b32.xlu0 %v3888_v3, %s3830_s8 }
  0xaf   : > { %1775 = vrot.lane.b32.xlu1 %v3895_v4, %s3830_s8  ;;  %2889 = vmatprep.subr.bf16.mxu0 %v736_v45 }
  0xb0   : > { %v717_v46 = vpop.permute.xlu0 %716 }
  0xb1   : > { %v735_v47 = vsel %vm734_vm4, %v717_v46, %v719_v43  ;;  %v723_v48 = vpop.permute.xlu1 %722 }
  0xb2   : > { %v737_v49 = vsel %vm734_vm4, %v721_v44, %v723_v48  ;;  %1867 = vrot.lane.b32.xlu0 %v3877_v0, %s3831_s9  ;;  %2890 = vmatpush1.bf16.msra.mxu0 %v735_v47 }
  0xb3   : > { %1869 = vrot.lane.b32.xlu1 %v3885_v2, %s3831_s9 }
  0xb4   : > { %v4101_v50 = vpop.permute.xlu0 %724 }
  0xb5   : > { %v738_v51 = vsel %vm734_vm4, %v723_v48, %v4101_v50  ;;  %v811_v52 = vpop.permute.xlu1 %810 }
  0xb6   : > { %1865 = vrot.lane.b32.xlu0 %v3880_v1, %s3831_s9  ;;  %2971 = vmatprep.subr.bf16.mxu1 %v738_v51 }
  0xb7   : > { %1871 = vrot.lane.b32.xlu1 %v3888_v3, %s3831_s9  ;;  %2972 = vmatpush1.bf16.msra.mxu1 %v737_v49 }
  0xb8   : > { %v813_v53 = vpop.permute.xlu0 %812 }
  0xb9   : > { %v828_v54 = vsel %vm826_vm5, %v811_v52, %v813_v53  ;;  %v809_v55 = vpop.permute.xlu1 %808 }
  0xba   : > { %v827_v56 = vsel %vm826_vm5, %v809_v55, %v811_v52  ;;  %1873 = vrot.lane.b32.xlu0 %v3895_v4, %s3831_s9  ;;  %2891 = vmatprep.subr.bf16.mxu0 %v828_v54  ;;  %v3838_v55 = vmov 0  }
  0xbb   : > { %1965 = vrot.lane.b32.xlu1 %v3877_v0, %s3832_s10  ;;  %2892 = vmatpush1.bf16.msra.mxu0 %v827_v56  ;;  %173 = vst [vmem:[#allocation2 + $0x710] sm:$0xff] %v3838_v55  ;;  %181 = vst.msk [vmem:[#allocation2 + $0x748] sm:$0xff] %vm180_vm12, %v3838_v55 }
  0xbc   : > { %v815_v57 = vpop.permute.xlu0 %814  ;;  %3755 = vset.pattern.permute.xlu0 %v3838_v55  ;;  %190 = vst.msk [vmem:[#allocation2 + $0x790] sm:$0xff] %vm180_vm12, %v3838_v55  ;;  %199 = vst.msk [vmem:[#allocation2 + $0x7d8] sm:$0xff] %vm180_vm12, %v3838_v55 }
  0xbd   : > { %v829_v58 = vsel %vm826_vm5, %v813_v53, %v815_v57  ;;  %v4116_v59 = vpop.permute.xlu1 %816  ;;  %208 = vst.msk [vmem:[#allocation2 + $0x820] sm:$0xff] %vm180_vm12, %v3838_v55  ;;  %217 = vst.msk [vmem:[#allocation2 + $0x868] sm:$0xff] %vm180_vm12, %v3838_v55 }
  0xbe   : > { %v830_v60 = vsel %vm826_vm5, %v815_v57, %v4116_v59  ;;  %1967 = vrot.lane.b32.xlu0 %v3885_v2, %s3832_s10  ;;  %226 = vst.msk [vmem:[#allocation2 + $0x8b0] sm:$0xff] %vm180_vm12, %v3838_v55  ;;  %235 = vst.msk [vmem:[#allocation2 + $0x8f8] sm:$0xff] %vm180_vm12, %v3838_v55 }
  0xbf   : > { %1963 = vrot.lane.b32.xlu1 %v3880_v1, %s3832_s10  ;;  %2973 = vmatprep.subr.bf16.mxu1 %v830_v60 }
  0xc0   : > { %v903_v61 = vpop.permute.xlu0 %902  ;;  %2974 = vmatpush1.bf16.msra.mxu1 %v829_v58 }
  0xc1   : > { %v905_v62 = vpop.permute.xlu1 %904 }
  0xc2   : > { %v920_v63 = vsel %vm918_vm6, %v903_v61, %v905_v62  ;;  %1969 = vrot.lane.b32.xlu0 %v3888_v3, %s3832_s10 }
  0xc3   : > { %1971 = vrot.lane.b32.xlu1 %v3895_v4, %s3832_s10  ;;  %2893 = vmatprep.subr.bf16.mxu0 %v920_v63 }
  0xc4   : > { %v901_v5 = vpop.permute.xlu0 %900 }
  0xc5   : > { %v919_v6 = vsel %vm918_vm6, %v901_v5, %v903_v61  ;;  %v907_v7 = vpop.permute.xlu1 %906 }
  0xc6   : > { %v921_v8 = vsel %vm918_vm6, %v905_v62, %v907_v7  ;;  %2063 = vrot.lane.b32.xlu0 %v3877_v0, %s3833_s11  ;;  %2894 = vmatpush1.bf16.msra.mxu0 %v919_v6  ;;  %v4144_v0 = vld [vmem:[%s3874_s17 + $0x8] ss:$40 sps:$4 sm:$0xff]  }
  0xc7   : > { %2065 = vrot.lane.b32.xlu1 %v3885_v2, %s3833_s11 }
  0xc8   : > { %v4135_v9 = vpop.permute.xlu0 %908 }
  0xc9   : > { %v922_v10 = vsel %vm918_vm6, %v907_v7, %v4135_v9  ;;  %v995_v11 = vpop.permute.xlu1 %994 }
  0xca   : > { %2061 = vrot.lane.b32.xlu0 %v3880_v1, %s3833_s11  ;;  %2975 = vmatprep.subr.bf16.mxu1 %v922_v10  ;;  %v4151_v1 = vld [vmem:[%s3874_s17 + $0xc] ss:$40 sps:$4 sm:$0xff]  }
  0xcb   : > { %2067 = vrot.lane.b32.xlu1 %v3888_v3, %s3833_s11  ;;  %2976 = vmatpush1.bf16.msra.mxu1 %v921_v8  ;;  %v4156_v3 = vld [vmem:[%s3874_s17 + $0x4] ss:$40 sps:$4 sm:$0xff]   ;;  %v4258_v8 = vld [vmem:[%s3874_s17 + $0x14] ss:$40 sps:$4 sm:$0xff]  }
  0xcc   : > { %v997_v2 = vpop.permute.xlu0 %996 }
  0xcd   : > { %v1012_v13 = vsel %vm1010_vm7, %v995_v11, %v997_v2  ;;  %v993_v14 = vpop.permute.xlu1 %992 }
  0xce   : > { %v1011_v15 = vsel %vm1010_vm7, %v993_v14, %v995_v11  ;;  %2069 = vrot.lane.b32.xlu0 %v3895_v4, %s3833_s11  ;;  %2895 = vmatprep.subr.bf16.mxu0 %v1012_v13  ;;  %v4171_v4 = vld [vmem:[%s3874_s17 + $0x14] ss:$40 sps:$4 sm:$0xff]   ;;  %v4266_v11 = vld [vmem:[%s3874_s17 + $0x18] ss:$40 sps:$4 sm:$0xff]  }
  0xcf   : > { %2158 = vrot.lane.b32.xlu1 %v4144_v0, %s3834_s14  ;;  %2896 = vmatpush1.bf16.msra.mxu0 %v1011_v15  ;;  %v4270_v14 = vld [vmem:[%s3874_s17 + $0x18] ss:$40 sps:$4 sm:$0xff]  }
  0xd0   : > { %v999_v16 = vpop.permute.xlu0 %998 }
  0xd1   : > { %v1013_v17 = vsel %vm1010_vm7, %v997_v2, %v999_v16  ;;  %v4159_v18 = vpop.permute.xlu1 %1000 }
  0xd2   : > { %v1014_v19 = vsel %vm1010_vm7, %v999_v16, %v4159_v18  ;;  %2160 = vrot.lane.b32.xlu0 %v4151_v1, %s3834_s14 }
  0xd3   : > { %2156 = vrot.lane.b32.xlu1 %v4156_v3, %s3834_s14  ;;  %2977 = vmatprep.subr.bf16.mxu1 %v1014_v19 }
  0xd4   : > { %v1087_v22 = vpop.permute.xlu0 %1086  ;;  %2978 = vmatpush1.bf16.msra.mxu1 %v1013_v17 }
  0xd5   : > { %v1089_v23 = vpop.permute.xlu1 %1088 }
  0xd6   : > { %v1104_v24 = vsel %vm1102_vm8, %v1087_v22, %v1089_v23  ;;  %2162 = vrot.lane.b32.xlu0 %v4164_v20, %s3834_s14 }
  0xd7   : > { %2164 = vrot.lane.b32.xlu1 %v4171_v4, %s3834_s14  ;;  %2897 = vmatprep.subr.bf16.mxu0 %v1104_v24 }
  0xd8   : > { %v1085_v25 = vpop.permute.xlu0 %1084 }
  0xd9   : > { %v1103_v26 = vsel %vm1102_vm8, %v1085_v25, %v1087_v22  ;;  %v1091_v28 = vpop.permute.xlu1 %1090  ;;  %v3777_v25 = vld [vmem:[%s3874_s17 + $0x20] ss:$40 sps:$4 sm:$0xff]  }
  0xda   : > { %v1105_v29 = vsel %vm1102_vm8, %v1089_v23, %v1091_v28  ;;  %2250 = vrot.lane.b32.xlu0 %v4144_v0, %s3835_s15  ;;  %2898 = vmatpush1.bf16.msra.mxu0 %v1103_v26 }
  0xdb   : > { %2252 = vrot.lane.b32.xlu1 %v4151_v1, %s3835_s15 }
  0xdc   : > { %v4184_v31 = vpop.permute.xlu0 %1092 }
  0xdd   : > { %v1106_v33 = vsel %vm1102_vm8, %v1091_v28, %v4184_v31  ;;  %v1182_v34 = vpop.permute.xlu1 %1181 }
  0xde   : > { %2248 = vrot.lane.b32.xlu0 %v4156_v3, %s3835_s15  ;;  %2979 = vmatprep.subr.bf16.mxu1 %v1106_v33  ;;  %v4302_v33 = vld [vmem:[%s3874_s17 + $0x14] ss:$40 sps:$4 sm:$0xff]  }
  0xdf   : > { %2254 = vrot.lane.b32.xlu1 %v4164_v20, %s3835_s15  ;;  %2980 = vmatpush1.bf16.msra.mxu1 %v1105_v29 }
  0xe0   : > { %v1184_v35 = vpop.permute.xlu0 %1183 }
  0xe1   : > { %v1201_v36 = vsel %vm1199_vm9, %v1182_v34, %v1184_v35  ;;  %v1180_v37 = vpop.permute.xlu1 %1179 }
  0xe2   : > { %v1200_v38 = vsel %vm1199_vm9, %v1180_v37, %v1182_v34  ;;  %2256 = vrot.lane.b32.xlu0 %v4171_v4, %s3835_s15  ;;  %2899 = vmatprep.subr.bf16.mxu0 %v1201_v36 }
  0xe3   : > { %2342 = vrot.lane.b32.xlu1 %v4144_v0, %s3836_s16  ;;  %2900 = vmatpush1.bf16.msra.mxu0 %v1200_v38 }
  0xe4   : > { %v1186_v39 = vpop.permute.xlu0 %1185 }
  0xe5   : > { %v1202_v40 = vsel %vm1199_vm9, %v1184_v35, %v1186_v39  ;;  %v4199_v42 = vpop.permute.xlu1 %1187  ;;  %v4309_v35 = vld [vmem:[%s3874_s17 + $0x10] ss:$40 sps:$4 sm:$0xff]  }
  0xe6   : > { %v1203_v43 = vsel %vm1199_vm9, %v1186_v39, %v4199_v42  ;;  %2344 = vrot.lane.b32.xlu0 %v4151_v1, %s3836_s16  ;;  %v3778_v39 = vld [vmem:[%s3874_s17 + $0x20] ss:$40 sps:$4 sm:$0xff]  }
  0xe7   : > { %2340 = vrot.lane.b32.xlu1 %v4156_v3, %s3836_s16  ;;  %2981 = vmatprep.subr.bf16.mxu1 %v1203_v43 }
  0xe8   : > { %v1280_v44 = vpop.permute.xlu0 %1279  ;;  %2982 = vmatpush1.bf16.msra.mxu1 %v1202_v40 }
  0xe9   : > { %v1282_v45 = vpop.permute.xlu1 %1281 }
  0xea   : > { %v1299_v46 = vsel %vm1297_vm10, %v1280_v44, %v1282_v45  ;;  %2346 = vrot.lane.b32.xlu0 %v4164_v20, %s3836_s16 }
  0xeb   : > { %2348 = vrot.lane.b32.xlu1 %v4171_v4, %s3836_s16  ;;  %2901 = vmatprep.subr.bf16.mxu0 %v1299_v46  ;;  %v4326_v46 = vld [vmem:[%s4935_s1 + $0x8] sm:$0xff] }
  0xec   : > { %v1278_v47 = vpop.permute.xlu0 %1277 }
  0xed   : > { %v1298_v48 = vsel %vm1297_vm10, %v1278_v47, %v1280_v44  ;;  %v1284_v49 = vpop.permute.xlu1 %1283 }
  0xee   : > { %v1300_v51 = vsel %vm1297_vm10, %v1282_v45, %v1284_v49  ;;  %2434 = vrot.lane.b32.xlu0 %v4144_v0, %s3837_s5  ;;  %2902 = vmatpush1.bf16.msra.mxu0 %v1298_v48  ;;  %v4321_v45 = vcombine.low %v4053_v27, %v4053_v27 }
  0xef   : > { %2436 = vrot.lane.b32.xlu1 %v4151_v1, %s3837_s5 }
  0xf0   : > { %v4218_v52 = vpop.permute.xlu0 %1285 }
  0xf1   : > { %v1301_v53 = vsel %vm1297_vm10, %v1284_v49, %v4218_v52  ;;  %v1378_v54 = vpop.permute.xlu1 %1377  ;;  %v4336_v49 = vcombine.high %v4326_v46, %v4326_v46 }
  0xf2   : > { %2432 = vrot.lane.b32.xlu0 %v4156_v3, %s3837_s5  ;;  %2983 = vmatprep.subr.bf16.mxu1 %v1301_v53  ;;  %v3779_v53 = vld [vmem:[%s3874_s17 + $0x20] ss:$40 sps:$4 sm:$0xff]  }
  0xf3   : > { %2438 = vrot.lane.b32.xlu1 %v4164_v20, %s3837_s5  ;;  %2984 = vmatpush1.bf16.msra.mxu1 %v1300_v51 }
  0xf4   : > { %v1380_v56 = vpop.permute.xlu0 %1379 }
  0xf5   : > { %v1397_v57 = vsel %vm1395_vm11, %v1378_v54, %v1380_v56  ;;  %v1376_v58 = vpop.permute.xlu1 %1375 }
  0xf6   : > { %v1396_v60 = vsel %vm1395_vm11, %v1376_v58, %v1378_v54  ;;  %2440 = vrot.lane.b32.xlu0 %v4171_v4, %s3837_s5  ;;  %2903 = vmatprep.subr.bf16.mxu0 %v1397_v57 }
  0xf7   : > { %2526 = vrot.lane.b32.xlu1 %v4144_v0, %s3839_s6  ;;  %2904 = vmatpush1.bf16.msra.mxu0 %v1396_v60 }
  0xf8   : > { %v1382_v61 = vpop.permute.xlu0 %1381 }
  0xf9   : > { %v1398_v62 = vsel %vm1395_vm11, %v1380_v56, %v1382_v61  ;;  %v4235_v63 = vpop.permute.xlu1 %1383 }
  0xfa   : > { %v1399_v5 = vsel %vm1395_vm11, %v1382_v61, %v4235_v63  ;;  %2528 = vrot.lane.b32.xlu0 %v4151_v1, %s3839_s6  ;;  %v4276_v1 = vld [vmem:[%s3874_s17 + $0x1c] ss:$40 sps:$4 sm:$0xff]  }
  0xfb   : > { %2524 = vrot.lane.b32.xlu1 %v4156_v3, %s3839_s6  ;;  %2985 = vmatprep.subr.bf16.mxu1 %v1399_v5  ;;  %v3776_v3 = vld [vmem:[%s3874_s17 + $0x20] ss:$40 sps:$4 sm:$0xff]  }
  0xfc   : > { %v1476_v6 = vpop.permute.xlu0 %1475  ;;  %2986 = vmatpush1.bf16.msra.mxu1 %v1398_v62 }
  0xfd   : > { %v1478_v7 = vpop.permute.xlu1 %1477 }
  0xfe   : > { %v1495_v10 = vsel %vm1493_vm13, %v1476_v6, %v1478_v7  ;;  %2530 = vrot.lane.b32.xlu0 %v4164_v20, %s3839_s6  ;;  %v4286_v20 = vld [vmem:[%s3874_s17 + $0x1c] ss:$40 sps:$4 sm:$0xff]  }
  0xff   : > { %2532 = vrot.lane.b32.xlu1 %v4171_v4, %s3839_s6  ;;  %2905 = vmatprep.subr.bf16.mxu0 %v1495_v10 }
 0x100   : > { %v1474_v0 = vpop.permute.xlu0 %1473 }
 0x101   : > { %v1494_v2 = vsel %vm1493_vm13, %v1474_v0, %v1476_v6  ;;  %v1480_v13 = vpop.permute.xlu1 %1479  ;;  %v3781_v6 = vld [vmem:[%s3874_s17 + $0x20] ss:$40 sps:$4 sm:$0xff]  }
 0x102   : > { %v1496_v15 = vsel %vm1493_vm13, %v1478_v7, %v1480_v13  ;;  %358 = vrot.lane.b32.xlu0 %v4258_v8, %s3815_s18  ;;  %2906 = vmatpush1.bf16.msra.mxu0 %v1494_v2 }
 0x103   : > { %360 = vrot.lane.b32.xlu1 %v4266_v11, %s3815_s18 }
 0x104   : > { %v4281_v16 = vpop.permute.xlu0 %1481 }
 0x105   : > { %v1497_v17 = vsel %vm1493_vm13, %v1480_v13, %v4281_v16  ;;  %v1574_v19 = vpop.permute.xlu1 %1573 }
 0x106   : > { %362 = vrot.lane.b32.xlu0 %v4276_v1, %s3815_s18  ;;  %2987 = vmatprep.subr.bf16.mxu1 %v1497_v17  ;;  %v3783_v17 = vld [vmem:[%s3874_s17 + $0x20] ss:$40 sps:$4 sm:$0xff]  }
 0x107   : > { %364 = vrot.lane.b32.xlu1 %v3776_v3, %s3815_s18  ;;  %2988 = vmatpush1.bf16.msra.mxu1 %v1496_v15 }
 0x108   : > { %v1576_v4 = vpop.permute.xlu0 %1575 }
 0x109   : > { %v1593_v22 = vsel %vm4938_vm14, %v1574_v19, %v1576_v4  ;;  %v1572_v23 = vpop.permute.xlu1 %1571 }
 0x10a   : > { %v1592_v24 = vsel %vm4938_vm14, %v1572_v23, %v1574_v19  ;;  %450 = vrot.lane.b32.xlu0 %v4258_v8, %s3816_s19  ;;  %2907 = vmatprep.subr.bf16.mxu0 %v1593_v22 }
 0x10b   : > { %452 = vrot.lane.b32.xlu1 %v4266_v11, %s3816_s19  ;;  %2908 = vmatpush1.bf16.msra.mxu0 %v1592_v24 }
 0x10c   : > { %v1578_v26 = vpop.permute.xlu0 %1577 }
 0x10d   : > { %v1594_v28 = vsel %vm4938_vm14, %v1576_v4, %v1578_v26  ;;  %v4299_v29 = vpop.permute.xlu1 %1579 }
 0x10e   : > { %v1595_v34 = vsel %vm4938_vm14, %v1578_v26, %v4299_v29  ;;  %454 = vrot.lane.b32.xlu0 %v4276_v1, %s3816_s19  ;;  %vm4940_vm14 = vcmask 179200  }
 0x10f   : > { %456 = vrot.lane.b32.xlu1 %v3777_v25, %s3816_s19  ;;  %2989 = vmatprep.subr.bf16.mxu1 %v1595_v34 }
 0x110   : > { %v1672_v36 = vpop.permute.xlu0 %1671  ;;  %2990 = vmatpush1.bf16.msra.mxu1 %v1594_v28  ;;  %v3784_v28 = vld [vmem:[%s3874_s17 + $0x20] ss:$40 sps:$4 sm:$0xff]  }
 0x111   : > { %v1674_v37 = vpop.permute.xlu1 %1673 }
 0x112   : > { %v1691_v38 = vsel %vm4939_vm15, %v1672_v36, %v1674_v37  ;;  %542 = vrot.lane.b32.xlu0 %v4258_v8, %s3817_s20 }
 0x113   : > { %544 = vrot.lane.b32.xlu1 %v4266_v11, %s3817_s20  ;;  %2909 = vmatprep.subr.bf16.mxu0 %v1691_v38 }
 0x114   : > { %v1670_v40 = vpop.permute.xlu0 %1669 }
 0x115   : > { %v1690_v43 = vsel %vm4939_vm15, %v1670_v40, %v1672_v36  ;;  %v1676_v44 = vpop.permute.xlu1 %1675 }
 0x116   : > { %v1692_v47 = vsel %vm4939_vm15, %v1674_v37, %v1676_v44  ;;  %546 = vrot.lane.b32.xlu0 %v4276_v1, %s3817_s20  ;;  %2910 = vmatpush1.bf16.msra.mxu0 %v1690_v43 }
 0x117   : > { %548 = vrot.lane.b32.xlu1 %v3778_v39, %s3817_s20 }
 0x118   : > { %v4332_v48 = vpop.permute.xlu0 %1677 }
 0x119   : > { %v1693_v27 = vsel %vm4939_vm15, %v1676_v44, %v4332_v48  ;;  %v1770_v51 = vpop.permute.xlu1 %1769  ;;  %2912 = vmatmul.mubr.bf16.vlgmr.msra.gmra.mrb[0].mxu0 %v4321_v45  ;;  %vm4941_vm15 = vcmask 171008   ;;  %v3785_v44 = vld [vmem:[%s3874_s17 + $0x20] ss:$40 sps:$4 sm:$0xff]  }
 0x11a   : > { %634 = vrot.lane.b32.xlu0 %v4258_v8, %s3818_s21  ;;  %2991 = vmatprep.subr.bf16.mxu1 %v1693_v27 }
 0x11b   : > { %636 = vrot.lane.b32.xlu1 %v4266_v11, %s3818_s21  ;;  %2992 = vmatpush1.bf16.msra.mxu1 %v1692_v47 }
 0x11c   : > { %v1772_v54 = vpop.permute.xlu0 %1771  ;;  %2952 = vmatprep.mubr.bf16.mxu0 %v4336_v49 }
 0x11d   : > { %v1789_v56 = vsel %vm4940_vm14, %v1770_v51, %v1772_v54  ;;  %v1768_v57 = vpop.permute.xlu1 %1767 }
 0x11e   : > { %v1788_v58 = vsel %vm4940_vm14, %v1768_v57, %v1770_v51  ;;  %638 = vrot.lane.b32.xlu0 %v4276_v1, %s3818_s21  ;;  %2920 = vmatprep.subr.bf16.mxu0 %v1789_v56 }
 0x11f   : > { %640 = vrot.lane.b32.xlu1 %v3779_v53, %s3818_s21  ;;  %2921 = vmatpush1.bf16.msra.mxu0 %v1788_v58  ;;  %v3786_v58 = vld [vmem:[%s3874_s17 + $0x20] ss:$40 sps:$4 sm:$0xff]   ;;  %s3721_s21 = smul.u32 36, %s4990_s13 }
 0x120   : > { %v1774_v60 = vpop.permute.xlu0 %1773  ;;  %2994 = vmatmul.mubr.bf16.vlgmr.msra.gmra.mrb[0].mxu1 %v4321_v45 }
 0x121   : > { %v1790_v61 = vsel %vm4940_vm14, %v1772_v54, %v1774_v60  ;;  %v4354_v62 = vpop.permute.xlu1 %1775  ;;  %3034 = vmatprep.mubr.bf16.mxu1 %v4336_v49 }
 0x122   : > { %v1791_v5 = vsel %vm4940_vm14, %v1774_v60, %v4354_v62  ;;  %726 = vrot.lane.b32.xlu0 %v4258_v8, %s3819_s22  ;;  %vm4942_vm14 = vcmask 162816  }
 0x123   : > { %728 = vrot.lane.b32.xlu1 %v4266_v11, %s3819_s22  ;;  %3002 = vmatprep.subr.bf16.mxu1 %v1791_v5 }
 0x124   : > { %v1868_v7 = vpop.permute.xlu0 %1867  ;;  %3003 = vmatpush1.bf16.msra.mxu1 %v1790_v61 }
 0x125   : > { %v1870_v10 = vpop.permute.xlu1 %1869 }
 0x126   : > { %v1887_v0 = vsel %vm4941_vm15, %v1868_v7, %v1870_v10  ;;  %730 = vrot.lane.b32.xlu0 %v4276_v1, %s3819_s22 }
 0x127   : > { %732 = vrot.lane.b32.xlu1 %v3781_v6, %s3819_s22  ;;  %2922 = vmatprep.subr.bf16.mxu0 %v1887_v0 }
 0x128   : > { %v1866_v2 = vpop.permute.xlu0 %1865 }
 0x129   : > { %v1886_v13 = vsel %vm4941_vm15, %v1866_v2, %v1868_v7  ;;  %v1872_v15 = vpop.permute.xlu1 %1871 }
 0x12a   : > { %v1888_v3 = vsel %vm4941_vm15, %v1870_v10, %v1872_v15  ;;  %818 = vrot.lane.b32.xlu0 %v4258_v8, %s3820_s23  ;;  %2923 = vmatpush1.bf16.msra.mxu0 %v1886_v13  ;;  %v4432_v13 = vld [vmem:[%s3874_s17 + $0x20] ss:$40 sps:$4 sm:$0xff]  }
 0x12b   : > { %820 = vrot.lane.b32.xlu1 %v4266_v11, %s3820_s23 }
 0x12c   : > { %v4375_v19 = vpop.permute.xlu0 %1873 }
 0x12d   : > { %v1889_v4 = vsel %vm4941_vm15, %v1872_v15, %v4375_v19  ;;  %v1966_v22 = vpop.permute.xlu1 %1965  ;;  %vm4943_vm15 = vcmask 154624  }
 0x12e   : > { %822 = vrot.lane.b32.xlu0 %v4276_v1, %s3820_s23  ;;  %3004 = vmatprep.subr.bf16.mxu1 %v1889_v4 }
 0x12f   : > { %824 = vrot.lane.b32.xlu1 %v3783_v17, %s3820_s23  ;;  %3005 = vmatpush1.bf16.msra.mxu1 %v1888_v3 }
 0x130   : > { %v1968_v23 = vpop.permute.xlu0 %1967 }
 0x131   : > { %v1985_v24 = vsel %vm4942_vm14, %v1966_v22, %v1968_v23  ;;  %v1964_v25 = vpop.permute.xlu1 %1963 }
 0x132   : > { %v1984_v26 = vsel %vm4942_vm14, %v1964_v25, %v1966_v22  ;;  %910 = vrot.lane.b32.xlu0 %v4258_v8, %s3821_s24  ;;  %2924 = vmatprep.subr.bf16.mxu0 %v1985_v24 }
 0x133   : > { %912 = vrot.lane.b32.xlu1 %v4266_v11, %s3821_s24  ;;  %2925 = vmatpush1.bf16.msra.mxu0 %v1984_v26 }
 0x134   : > { %v1970_v34 = vpop.permute.xlu0 %1969 }
 0x135   : > { %v1986_v36 = vsel %vm4942_vm14, %v1968_v23, %v1970_v34  ;;  %v4390_v37 = vpop.permute.xlu1 %1971 }
 0x136   : > { %v1987_v38 = vsel %vm4942_vm14, %v1970_v34, %v4390_v37  ;;  %914 = vrot.lane.b32.xlu0 %v4276_v1, %s3821_s24  ;;  %vm4944_vm14 = vcmask 949248  }
 0x137   : > { %916 = vrot.lane.b32.xlu1 %v3784_v28, %s3821_s24  ;;  %3006 = vmatprep.subr.bf16.mxu1 %v1987_v38  ;;  %s4916_s24 = scalar_lea.vmem %s4937_s3, %s3721_s21 }
 0x138   : > { %v2064_v39 = vpop.permute.xlu0 %2063  ;;  %3007 = vmatpush1.bf16.msra.mxu1 %v1986_v36 }
 0x139   : > { %v2066_v40 = vpop.permute.xlu1 %2065 }
 0x13a   : > { %v2083_v43 = vsel %vm4943_vm15, %v2064_v39, %v2066_v40  ;;  %1002 = vrot.lane.b32.xlu0 %v4258_v8, %s3822_s25 }
 0x13b   : > { %1004 = vrot.lane.b32.xlu1 %v4266_v11, %s3822_s25  ;;  %2926 = vmatprep.subr.bf16.mxu0 %v2083_v43 }
 0x13c   : > { %v2062_v47 = vpop.permute.xlu0 %2061 }
 0x13d   : > { %v2082_v27 = vsel %vm4943_vm15, %v2062_v47, %v2064_v39  ;;  %v2068_v51 = vpop.permute.xlu1 %2067 }
 0x13e   : > { %v2084_v53 = vsel %vm4943_vm15, %v2066_v40, %v2068_v51  ;;  %1006 = vrot.lane.b32.xlu0 %v4276_v1, %s3822_s25  ;;  %2927 = vmatpush1.bf16.msra.mxu0 %v2082_v27 }
 0x13f   : > { %1008 = vrot.lane.b32.xlu1 %v3785_v44, %s3822_s25 }
 0x140   : > { %v4408_v54 = vpop.permute.xlu0 %2069 }
 0x141   : > { %v2085_v56 = vsel %vm4943_vm15, %v2068_v51, %v4408_v54  ;;  %v2159_v57 = vpop.permute.xlu1 %2158  ;;  %vm4945_vm15 = vcmask 941056  }
 0x142   : > { %1094 = vrot.lane.b32.xlu0 %v4258_v8, %s3823_s26  ;;  %3008 = vmatprep.subr.bf16.mxu1 %v2085_v56 }
 0x143   : > { %1096 = vrot.lane.b32.xlu1 %v4266_v11, %s3823_s26  ;;  %3009 = vmatpush1.bf16.msra.mxu1 %v2084_v53 }
 0x144   : > { %v2161_v60 = vpop.permute.xlu0 %2160 }
 0x145   : > { %v2176_v61 = vsel %vm4944_vm14, %v2159_v57, %v2161_v60  ;;  %v2157_v5 = vpop.permute.xlu1 %2156 }
 0x146   : > { %v2175_v6 = vsel %vm4944_vm14, %v2157_v5, %v2159_v57  ;;  %1098 = vrot.lane.b32.xlu0 %v4276_v1, %s3823_s26  ;;  %2928 = vmatprep.subr.bf16.mxu0 %v2176_v61 }
 0x147   : > { %1100 = vrot.lane.b32.xlu1 %v3786_v58, %s3823_s26  ;;  %2929 = vmatpush1.bf16.msra.mxu0 %v2175_v6 }
 0x148   : > { %v2163_v7 = vpop.permute.xlu0 %2162 }
 0x149   : > { %v2177_v10 = vsel %vm4944_vm14, %v2161_v60, %v2163_v7  ;;  %v4423_v0 = vpop.permute.xlu1 %2164 }
 0x14a   : > { %v2178_v2 = vsel %vm4944_vm14, %v2163_v7, %v4423_v0  ;;  %1189 = vrot.lane.b32.xlu0 %v4258_v8, %s3824_s27  ;;  %vm4946_vm14 = vcmask 932864  }
 0x14b   : > { %1191 = vrot.lane.b32.xlu1 %v4266_v11, %s3824_s27  ;;  %3010 = vmatprep.subr.bf16.mxu1 %v2178_v2 }
 0x14c   : > { %v2251_v15 = vpop.permute.xlu0 %2250  ;;  %3011 = vmatpush1.bf16.msra.mxu1 %v2177_v10 }
 0x14d   : > { %v2253_v3 = vpop.permute.xlu1 %2252 }
 0x14e   : > { %v2268_v17 = vsel %vm4945_vm15, %v2251_v15, %v2253_v3  ;;  %1193 = vrot.lane.b32.xlu0 %v4276_v1, %s3824_s27 }
 0x14f   : > { %1195 = vrot.lane.b32.xlu1 %v4432_v13, %s3824_s27  ;;  %2930 = vmatprep.subr.bf16.mxu0 %v2268_v17 }
 0x150   : > { %v2249_v4 = vpop.permute.xlu0 %2248 }
 0x151   : > { %v2267_v22 = vsel %vm4945_vm15, %v2249_v4, %v2251_v15  ;;  %v2255_v23 = vpop.permute.xlu1 %2254 }
 0x152   : > { %v2269_v24 = vsel %vm4945_vm15, %v2253_v3, %v2255_v23  ;;  %1287 = vrot.lane.b32.xlu0 %v4258_v8, %s3825_s28  ;;  %2931 = vmatpush1.bf16.msra.mxu0 %v2267_v22 }
 0x153   : > { %1289 = vrot.lane.b32.xlu1 %v4266_v11, %s3825_s28 }
 0x154   : > { %v4445_v25 = vpop.permute.xlu0 %2256 }
 0x155   : > { %v2270_v26 = vsel %vm4945_vm15, %v2255_v23, %v4445_v25  ;;  %v2343_v28 = vpop.permute.xlu1 %2342  ;;  %vm2450_vm15 = vcmask 924672  }
 0x156   : > { %1291 = vrot.lane.b32.xlu0 %v4276_v1, %s3825_s28  ;;  %3012 = vmatprep.subr.bf16.mxu1 %v2270_v26 }
 0x157   : > { %1293 = vrot.lane.b32.xlu1 %v4432_v13, %s3825_s28  ;;  %3013 = vmatpush1.bf16.msra.mxu1 %v2269_v24 }
 0x158   : > { %v2345_v34 = vpop.permute.xlu0 %2344 }
 0x159   : > { %v2360_v36 = vsel %vm4946_vm14, %v2343_v28, %v2345_v34  ;;  %v2341_v38 = vpop.permute.xlu1 %2340 }
 0x15a   : > { %v2359_v39 = vsel %vm4946_vm14, %v2341_v38, %v2343_v28  ;;  %1385 = vrot.lane.b32.xlu0 %v4258_v8, %s3826_s29  ;;  %2932 = vmatprep.subr.bf16.mxu0 %v2360_v36 }
 0x15b   : > { %1387 = vrot.lane.b32.xlu1 %v4266_v11, %s3826_s29  ;;  %2933 = vmatpush1.bf16.msra.mxu0 %v2359_v39 }
 0x15c   : > { %v2347_v40 = vpop.permute.xlu0 %2346 }
 0x15d   : > { %v2361_v43 = vsel %vm4946_vm14, %v2345_v34, %v2347_v40  ;;  %v4460_v44 = vpop.permute.xlu1 %2348 }
 0x15e   : > { %v2362_v47 = vsel %vm4946_vm14, %v2347_v40, %v4460_v44  ;;  %1389 = vrot.lane.b32.xlu0 %v4276_v1, %s3826_s29  ;;  %vm2542_vm14 = vcmask 916480  }
 0x15f   : > { %1391 = vrot.lane.b32.xlu1 %v4432_v13, %s3826_s29  ;;  %3014 = vmatprep.subr.bf16.mxu1 %v2362_v47 }
 0x160   : > { %v2435_v27 = vpop.permute.xlu0 %2434  ;;  %3015 = vmatpush1.bf16.msra.mxu1 %v2361_v43 }
 0x161   : > { %v2437_v51 = vpop.permute.xlu1 %2436 }
 0x162   : > { %v2452_v53 = vsel %vm2450_vm15, %v2435_v27, %v2437_v51  ;;  %1483 = vrot.lane.b32.xlu0 %v4258_v8, %s3827_s30 }
 0x163   : > { %1485 = vrot.lane.b32.xlu1 %v4266_v11, %s3827_s30  ;;  %2934 = vmatprep.subr.bf16.mxu0 %v2452_v53 }
 0x164   : > { %v2433_v56 = vpop.permute.xlu0 %2432 }
 0x165   : > { %v2451_v57 = vsel %vm2450_vm15, %v2433_v56, %v2435_v27  ;;  %v2439_v58 = vpop.permute.xlu1 %2438 }
 0x166   : > { %v2453_v60 = vsel %vm2450_vm15, %v2437_v51, %v2439_v58  ;;  %1487 = vrot.lane.b32.xlu0 %v4276_v1, %s3827_s30  ;;  %2935 = vmatpush1.bf16.msra.mxu0 %v2451_v57 }
 0x167   : > { %1489 = vrot.lane.b32.xlu1 %v4432_v13, %s3827_s30 }
 0x168   : > { %v4479_v61 = vpop.permute.xlu0 %2440 }
 0x169   : > { %v2454_v5 = vsel %vm2450_vm15, %v2439_v58, %v4479_v61  ;;  %v2527_v6 = vpop.permute.xlu1 %2526 }
 0x16a   : > { %1581 = vrot.lane.b32.xlu0 %v4258_v8, %s3828_s4  ;;  %3016 = vmatprep.subr.bf16.mxu1 %v2454_v5 }
 0x16b   : > { %1583 = vrot.lane.b32.xlu1 %v4266_v11, %s3828_s4  ;;  %3017 = vmatpush1.bf16.msra.mxu1 %v2453_v60 }
 0x16c   : > { %v2529_v7 = vpop.permute.xlu0 %2528 }
 0x16d   : > { %v2544_v10 = vsel %vm2542_vm14, %v2527_v6, %v2529_v7  ;;  %v2525_v2 = vpop.permute.xlu1 %2524 }
 0x16e   : > { %v2543_v15 = vsel %vm2542_vm14, %v2525_v2, %v2527_v6  ;;  %1585 = vrot.lane.b32.xlu0 %v4276_v1, %s3828_s4  ;;  %2936 = vmatprep.subr.bf16.mxu0 %v2544_v10  ;;  %v4590_v6 = vcombine.low %v4326_v46, %v4326_v46 }
 0x16f   : > { %1587 = vrot.lane.b32.xlu1 %v4432_v13, %s3828_s4  ;;  %2937 = vmatpush1.bf16.msra.mxu0 %v2543_v15 }
 0x170   : > { %v2531_v3 = vpop.permute.xlu0 %2530  ;;  %2938 = vmatprep.subr.bf16.mxu0 %v3838_v55 }
 0x171   : > { %v2545_v17 = vsel %vm2542_vm14, %v2529_v7, %v2531_v3  ;;  %v4495_v4 = vpop.permute.xlu1 %2532 }
 0x172   : > { %v2546_v22 = vsel %vm2542_vm14, %v2531_v3, %v4495_v4  ;;  %1679 = vrot.lane.b32.xlu0 %v4258_v8, %s3829_s7 }
 0x173   : > { %1681 = vrot.lane.b32.xlu1 %v4266_v11, %s3829_s7  ;;  %3018 = vmatprep.subr.bf16.mxu1 %v2546_v22 }
 0x174   : > { %v359_v23 = vpop.permute.xlu0 %358  ;;  %2939 = vmatpush1.bf16.msra.mxu0 %v3838_v55  ;;  %3019 = vmatpush1.bf16.msra.mxu1 %v2545_v17  ;;  %v2111_v17 = vld [vmem:[%s3874_s17 + $0x14] sm:$0xff] }
 0x175   : > { %v4506_v24 = vsel %vm366_vm0, %v4022_v12, %v359_v23  ;;  %v361_v26 = vpop.permute.xlu1 %360  ;;  %2940 = vmatprep.subr.bf16.mxu0 %v3838_v55  ;;  %3020 = vmatprep.subr.bf16.mxu1 %v3838_v55 }
 0x176   : > { %v4511_v28 = vsel %vm366_vm0, %v359_v23, %v361_v26  ;;  %1683 = vrot.lane.b32.xlu0 %v4276_v1, %s3829_s7 }
 0x177   : > { %1685 = vrot.lane.b32.xlu1 %v4432_v13, %s3829_s7 }
 0x178   : > { %v363_v34 = vpop.permute.xlu0 %362  ;;  %2941 = vmatpush1.bf16.msra.mxu0 %v3838_v55  ;;  %3021 = vmatpush1.bf16.msra.mxu1 %v3838_v55 }
 0x179   : > { %v4520_v12 = vsel %vm366_vm0, %v361_v26, %v363_v34  ;;  %v365_v36 = vpop.permute.xlu1 %364  ;;  %2942 = vmatprep.subr.bf16.mxu0 %v3838_v55  ;;  %3022 = vmatprep.subr.bf16.mxu1 %v3838_v55 }
 0x17a   : > { %v4525_v38 = vsel %vm366_vm0, %v363_v34, %v365_v36  ;;  %392 = vst.msk [vmem:[#allocation2 + $0x88] sm:$0xff] %vm180_vm12, %v365_v36  ;;  %1777 = vrot.lane.b32.xlu0 %v4258_v8, %s3830_s8  ;;  %v3800_v34 = vld [vmem:[%s3874_s17 + $0x24] ss:$40 sps:$4 sm:$0xff]   ;;  %vm4947_vm0 = vcmask 441344  }
 0x17b   : > { %1779 = vrot.lane.b32.xlu1 %v4266_v11, %s3830_s8 }
 0x17c   : > { %v451_v39 = vpop.permute.xlu0 %450  ;;  %2943 = vmatpush1.bf16.msra.mxu0 %v3838_v55  ;;  %3023 = vmatpush1.bf16.msra.mxu1 %v3838_v55 }
 0x17d   : > { %v4536_v40 = vsel %vm458_vm1, %v4037_v21, %v451_v39  ;;  %v453_v43 = vpop.permute.xlu1 %452  ;;  %2944 = vmatprep.subr.bf16.mxu0 %v3838_v55  ;;  %3024 = vmatprep.subr.bf16.mxu1 %v3838_v55 }
 0x17e   : > { %v4541_v47 = vsel %vm458_vm1, %v451_v39, %v453_v43  ;;  %1781 = vrot.lane.b32.xlu0 %v4276_v1, %s3830_s8 }
 0x17f   : > { %1783 = vrot.lane.b32.xlu1 %v4432_v13, %s3830_s8 }
 0x180   : > { %v455_v11 = vpop.permute.xlu0 %454  ;;  %2945 = vmatpush1.bf16.msra.mxu0 %v3838_v55  ;;  %3025 = vmatpush1.bf16.msra.mxu1 %v3838_v55 }
 0x181   : > { %v4550_v21 = vsel %vm458_vm1, %v453_v43, %v455_v11  ;;  %v457_v27 = vpop.permute.xlu1 %456  ;;  %2946 = vmatprep.subr.bf16.mxu0 %v3838_v55  ;;  %3026 = vmatprep.subr.bf16.mxu1 %v3838_v55 }
 0x182   : > { %v4555_v51 = vsel %vm458_vm1, %v455_v11, %v457_v27  ;;  %484 = vst.msk [vmem:[#allocation2 + $0xd0] sm:$0xff] %vm180_vm12, %v457_v27  ;;  %1875 = vrot.lane.b32.xlu0 %v4258_v8, %s3831_s9  ;;  %v3801_v11 = vld [vmem:[%s3874_s17 + $0x24] ss:$40 sps:$4 sm:$0xff]   ;;  %vm4948_vm1 = vmmov %vm4947_vm0 }
 0x183   : > { %1877 = vrot.lane.b32.xlu1 %v4270_v14, %s3831_s9 }
 0x184   : > { %v543_v1 = vpop.permute.xlu0 %542  ;;  %2947 = vmatpush1.bf16.msra.mxu0 %v3838_v55  ;;  %3027 = vmatpush1.bf16.msra.mxu1 %v3838_v55 }
 0x185   : > { %v4566_v53 = vsel %vm550_vm2, %v4066_v32, %v543_v1  ;;  %v545_v56 = vpop.permute.xlu1 %544  ;;  %2948 = vmatprep.subr.bf16.mxu0 %v3838_v55  ;;  %3028 = vmatprep.subr.bf16.mxu1 %v3838_v55 }
 0x186   : > { %v556_v57 = vsel %vm550_vm2, %v543_v1, %v545_v56  ;;  %1879 = vrot.lane.b32.xlu0 %v4286_v20, %s3831_s9 }
 0x187   : > { %1881 = vrot.lane.b32.xlu1 %v4432_v13, %s3831_s9 }
 0x188   : > { %v547_v58 = vpop.permute.xlu0 %546  ;;  %2949 = vmatpush1.bf16.msra.mxu0 %v3838_v55  ;;  %3029 = vmatpush1.bf16.msra.mxu1 %v3838_v55 }
 0x189   : > { %v4578_v32 = vsel %vm550_vm2, %v545_v56, %v547_v58  ;;  %v549_v60 = vpop.permute.xlu1 %548  ;;  %2950 = vmatprep.subr.bf16.mxu0 %v3838_v55  ;;  %3030 = vmatprep.subr.bf16.mxu1 %v3838_v55 }
 0x18a   : > { %v558_v5 = vsel %vm550_vm2, %v547_v58, %v549_v60  ;;  %576 = vst.msk [vmem:[#allocation2 + $0x118] sm:$0xff] %vm180_vm12, %v549_v60  ;;  %1973 = vrot.lane.b32.xlu0 %v4258_v8, %s3832_s10  ;;  %v3802_v58 = vld [vmem:[%s3874_s17 + $0x24] ss:$40 sps:$4 sm:$0xff]   ;;  %vm4949_vm2 = vmmov %vm4947_vm0 }
 0x18b   : > { %1975 = vrot.lane.b32.xlu1 %v4270_v14, %s3832_s10 }
 0x18c   : > { %v635_v7 = vpop.permute.xlu0 %634  ;;  %2951 = vmatpush1.bf16.msra.mxu0 %v3838_v55  ;;  %3031 = vmatpush1.bf16.msra.mxu1 %v3838_v55 }
 0x18d   : > { %v647_v10 = vsel %vm642_vm3, %v4082_v41, %v635_v7  ;;  %v637_v2 = vpop.permute.xlu1 %636  ;;  %3032 = vmatprep.subr.bf16.mxu1 %v3838_v55  ;;  %3043 = vmatprep.subr.bf16.mxu0 %v4302_v33 }
 0x18e   : > { %v648_v15 = vsel %vm642_vm3, %v635_v7, %v637_v2  ;;  %1977 = vrot.lane.b32.xlu0 %v4286_v20, %s3832_s10 }
 0x18f   : > { %1979 = vrot.lane.b32.xlu1 %v4432_v13, %s3832_s10  ;;  %2953 = vmatmul.mubr.bf16.vlgmr.msra.gmra.mrb[0].mxu0 %v4590_v6 }
 0x190   : > { %v639_v46 = vpop.permute.xlu0 %638  ;;  %3033 = vmatpush1.bf16.msra.mxu1 %v3838_v55  ;;  %3044 = vmatpush1.bf16.msra.mxu0 %v4309_v35  ;;  %v2116_v55 = vld [vmem:[%s3874_s17 + $0x3c] sm:$0xff] }
 0x191   : > { %v649_v41 = vsel %vm642_vm3, %v637_v2, %v639_v46  ;;  %v641_v33 = vpop.permute.xlu1 %640  ;;  %3045 = vmatprep.subr.bf16.mxu0 %v4511_v28  ;;  %3125 = vmatprep.subr.bf16.mxu1 %v4286_v20  ;;  %v4628_v26 = vcombine.high %v2111_v17, %v2116_v55 }
 0x192   : > { %v650_v3 = vsel %vm642_vm3, %v639_v46, %v641_v33  ;;  %668 = vst.msk [vmem:[#allocation2 + $0x160] sm:$0xff] %vm180_vm12, %v641_v33  ;;  %2071 = vrot.lane.b32.xlu0 %v4258_v8, %s3833_s11  ;;  %3075 = vmatprep.mubr.bf16.mxu0 %v4058_v30  ;;  %vm4950_vm3 = vmmov %vm4947_vm0 }
 0x193   : > { %2073 = vrot.lane.b32.xlu1 %v4270_v14, %s3833_s11  ;;  %3035 = vmatmul.mubr.bf16.vlgmr.msra.gmra.mrb[0].mxu1 %v4590_v6 }
 0x194   : > { %v727_v35 = vpop.permute.xlu0 %726  ;;  %3046 = vmatpush1.bf16.msra.mxu0 %v4506_v24  ;;  %3126 = vmatpush1.bf16.msra.mxu1 %v4270_v14 }
 0x195   : > { %v739_v22 = vsel %vm734_vm4, %v4101_v50, %v727_v35  ;;  %v729_v23 = vpop.permute.xlu1 %728  ;;  %3047 = vmatprep.subr.bf16.mxu0 %v4541_v47  ;;  %3127 = vmatprep.subr.bf16.mxu1 %v4525_v38  ;;  %v4634_v50 = vld [vmem:[%s3874_s17 + $0x1c] ss:$40 sps:$4 sm:$0xff]  }
 0x196   : > { %v740_v8 = vsel %vm734_vm4, %v727_v35, %v729_v23  ;;  %2075 = vrot.lane.b32.xlu0 %v4286_v20, %s3833_s11  ;;  %3157 = vmatprep.mubr.bf16.mxu1 %v4058_v30 }
 0x197   : > { %2077 = vrot.lane.b32.xlu1 %v4432_v13, %s3833_s11  ;;  %v4645_v13 = vld [vmem:[%s3874_s17 + $0x20] ss:$40 sps:$4 sm:$0xff]  }
 0x198   : > { %v731_v14 = vpop.permute.xlu0 %730  ;;  %3048 = vmatpush1.bf16.msra.mxu0 %v4536_v40  ;;  %3128 = vmatpush1.bf16.msra.mxu1 %v4520_v12 }
 0x199   : > { %v741_v24 = vsel %vm734_vm4, %v729_v23, %v731_v14  ;;  %v733_v28 = vpop.permute.xlu1 %732  ;;  %3049 = vmatprep.subr.bf16.mxu0 %v556_v57  ;;  %3129 = vmatprep.subr.bf16.mxu1 %v4555_v51 }
 0x19a   : > { %v742_v20 = vsel %vm734_vm4, %v731_v14, %v733_v28  ;;  %760 = vst.msk [vmem:[#allocation2 + $0x1a8] sm:$0xff] %vm180_vm12, %v733_v28  ;;  %2166 = vrot.lane.b32.xlu0 %v4628_v26, %s3834_s14  ;;  %v3804_v14 = vld [vmem:[%s3874_s17 + $0x24] ss:$40 sps:$4 sm:$0xff]   ;;  %vm4951_vm4 = vcmask 187392  }
 0x19b   : > { %2168 = vrot.lane.b32.xlu1 %v4634_v50, %s3834_s14 }
 0x19c   : > { %v819_v12 = vpop.permute.xlu0 %818  ;;  %3050 = vmatpush1.bf16.msra.mxu0 %v4566_v53  ;;  %3130 = vmatpush1.bf16.msra.mxu1 %v4550_v21 }
 0x19d   : > { %v831_v36 = vsel %vm826_vm5, %v4116_v59, %v819_v12  ;;  %v821_v38 = vpop.permute.xlu1 %820  ;;  %3051 = vmatprep.subr.bf16.mxu0 %v648_v15  ;;  %3131 = vmatprep.subr.bf16.mxu1 %v558_v5 }
 0x19e   : > { %v832_v39 = vsel %vm826_vm5, %v819_v12, %v821_v38  ;;  %2170 = vrot.lane.b32.xlu0 %v4645_v13, %s3834_s14 }
 0x19f   : > { %2172 = vrot.lane.b32.xlu1 %v3800_v34, %s3834_s14 }
 0x1a0   : > { %v823_v40 = vpop.permute.xlu0 %822  ;;  %3052 = vmatpush1.bf16.msra.mxu0 %v647_v10  ;;  %3132 = vmatpush1.bf16.msra.mxu1 %v4578_v32 }
 0x1a1   : > { %v833_v43 = vsel %vm826_vm5, %v821_v38, %v823_v40  ;;  %v825_v47 = vpop.permute.xlu1 %824  ;;  %3053 = vmatprep.subr.bf16.mxu0 %v740_v8  ;;  %3133 = vmatprep.subr.bf16.mxu1 %v650_v3  ;;  %v1138_v8 = vld [vmem:[%s3874_s17 + $0x48] sm:$0xff] }
 0x1a2   : > { %v834_v59 = vsel %vm826_vm5, %v823_v40, %v825_v47  ;;  %852 = vst.msk [vmem:[#allocation2 + $0x1f0] sm:$0xff] %vm180_vm12, %v825_v47  ;;  %2258 = vrot.lane.b32.xlu0 %v4628_v26, %s3835_s15  ;;  %vm4952_vm5 = vmmov %vm4951_vm4 }
 0x1a3   : > { %2260 = vrot.lane.b32.xlu1 %v4634_v50, %s3835_s15 }
 0x1a4   : > { %v911_v21 = vpop.permute.xlu0 %910  ;;  %3054 = vmatpush1.bf16.msra.mxu0 %v739_v22  ;;  %3134 = vmatpush1.bf16.msra.mxu1 %v649_v41 }
 0x1a5   : > { %v923_v27 = vsel %vm918_vm6, %v4135_v9, %v911_v21  ;;  %v913_v51 = vpop.permute.xlu1 %912  ;;  %3055 = vmatprep.subr.bf16.mxu0 %v832_v39  ;;  %3135 = vmatprep.subr.bf16.mxu1 %v742_v20 }
 0x1a6   : > { %v924_v1 = vsel %vm918_vm6, %v911_v21, %v913_v51  ;;  %2262 = vrot.lane.b32.xlu0 %v4645_v13, %s3835_s15 }
 0x1a7   : > { %2264 = vrot.lane.b32.xlu1 %v3801_v11, %s3835_s15 }
 0x1a8   : > { %v915_v53 = vpop.permute.xlu0 %914  ;;  %3056 = vmatpush1.bf16.msra.mxu0 %v831_v36  ;;  %3136 = vmatpush1.bf16.msra.mxu1 %v741_v24 }
 0x1a9   : > { %v925_v56 = vsel %vm918_vm6, %v913_v51, %v915_v53  ;;  %v917_v57 = vpop.permute.xlu1 %916  ;;  %3057 = vmatprep.subr.bf16.mxu0 %v924_v1  ;;  %3137 = vmatprep.subr.bf16.mxu1 %v834_v59 }
 0x1aa   : > { %v926_v9 = vsel %vm918_vm6, %v915_v53, %v917_v57  ;;  %944 = vst.msk [vmem:[#allocation2 + $0x238] sm:$0xff] %vm180_vm12, %v917_v57  ;;  %2350 = vrot.lane.b32.xlu0 %v4628_v26, %s3836_s16  ;;  %vm4953_vm6 = vmmov %vm4951_vm4 }
 0x1ab   : > { %2352 = vrot.lane.b32.xlu1 %v4634_v50, %s3836_s16 }
 0x1ac   : > { %v1003_v32 = vpop.permute.xlu0 %1002  ;;  %3058 = vmatpush1.bf16.msra.mxu0 %v923_v27  ;;  %3138 = vmatpush1.bf16.msra.mxu1 %v833_v43  ;;  %v3805_v43 = vld [vmem:[%s3874_s17 + $0x20] ss:$40 sps:$4 sm:$0xff]  }
 0x1ad   : > { %v1015_v60 = vsel %vm1010_vm7, %v4159_v18, %v1003_v32  ;;  %v1005_v5 = vpop.permute.xlu1 %1004  ;;  %3139 = vmatprep.subr.bf16.mxu1 %v926_v9  ;;  %v3803_v18 = vld [vmem:[%s3874_s17 + $0x24] ss:$40 sps:$4 sm:$0xff]   ;;  %300 = vst.msk [vmem:[#allocation2 + $0x40] sm:$0xff] %vm180_vm12, %v3805_v43 }
 0x1ae   : > { %v1016_v7 = vsel %vm1010_vm7, %v1003_v32, %v1005_v5  ;;  %2354 = vrot.lane.b32.xlu0 %v4645_v13, %s3836_s16 }
 0x1af   : > { %2356 = vrot.lane.b32.xlu1 %v3802_v58, %s3836_s16  ;;  %3059 = vmatprep.subr.bf16.mxu0 %v1016_v7 }
 0x1b0   : > { %v1007_v10 = vpop.permute.xlu0 %1006  ;;  %3060 = vmatpush1.bf16.msra.mxu0 %v1015_v60  ;;  %3140 = vmatpush1.bf16.msra.mxu1 %v925_v56 }
 0x1b1   : > { %v1017_v2 = vsel %vm1010_vm7, %v1005_v5, %v1007_v10  ;;  %v1009_v15 = vpop.permute.xlu1 %1008 }
 0x1b2   : > { %v1018_v46 = vsel %vm1010_vm7, %v1007_v10, %v1009_v15  ;;  %1036 = vst.msk [vmem:[#allocation2 + $0x280] sm:$0xff] %vm180_vm12, %v1009_v15  ;;  %2442 = vrot.lane.b32.xlu0 %v4628_v26, %s3837_s5  ;;  %vm4954_vm7 = vmmov %vm4951_vm4 }
 0x1b3   : > { %2444 = vrot.lane.b32.xlu1 %v4634_v50, %s3837_s5  ;;  %3141 = vmatprep.subr.bf16.mxu1 %v1018_v46 }
 0x1b4   : > { %v1095_v41 = vpop.permute.xlu0 %1094  ;;  %3142 = vmatpush1.bf16.msra.mxu1 %v1017_v2 }
 0x1b5   : > { %v1107_v33 = vsel %vm1102_vm8, %v4184_v31, %v1095_v41  ;;  %v1097_v3 = vpop.permute.xlu1 %1096  ;;  %v1133_v31 = vld [vmem:[%s3874_s17 + $0x20] sm:$0xff] }
 0x1b6   : > { %v1108_v17 = vsel %vm1102_vm8, %v1095_v41, %v1097_v3  ;;  %2446 = vrot.lane.b32.xlu0 %v4645_v13, %s3837_s5  ;;  %v3560_v12 = vcombine.high %v1133_v31, %v1138_v8 }
 0x1b7   : > { %2448 = vrot.lane.b32.xlu1 %v3803_v18, %s3837_s5  ;;  %3061 = vmatprep.subr.bf16.mxu0 %v1108_v17 }
 0x1b8   : > { %v1099_v55 = vpop.permute.xlu0 %1098  ;;  %3062 = vmatpush1.bf16.msra.mxu0 %v1107_v33 }
 0x1b9   : > { %v1109_v35 = vsel %vm1102_vm8, %v1097_v3, %v1099_v55  ;;  %v1101_v22 = vpop.permute.xlu1 %1100 }
 0x1ba   : > { %v1110_v23 = vsel %vm1102_vm8, %v1099_v55, %v1101_v22  ;;  %1128 = vst.msk [vmem:[#allocation2 + $0x2c8] sm:$0xff] %vm180_vm12, %v1101_v22  ;;  %2534 = vrot.lane.b32.xlu0 %v4628_v26, %s3839_s6  ;;  %vm4955_vm8 = vcmask 179200  }
 0x1bb   : > { %2536 = vrot.lane.b32.xlu1 %v4634_v50, %s3839_s6  ;;  %3143 = vmatprep.subr.bf16.mxu1 %v1110_v23 }
 0x1bc   : > { %v1190_v24 = vpop.permute.xlu0 %1189  ;;  %3144 = vmatpush1.bf16.msra.mxu1 %v1109_v35 }
 0x1bd   : > { %v1204_v28 = vsel %vm1199_vm9, %v4199_v42, %v1190_v24  ;;  %v1192_v20 = vpop.permute.xlu1 %1191 }
 0x1be   : > { %v1205_v34 = vsel %vm1199_vm9, %v1190_v24, %v1192_v20  ;;  %2538 = vrot.lane.b32.xlu0 %v4645_v13, %s3839_s6 }
 0x1bf   : > { %2540 = vrot.lane.b32.xlu1 %v3804_v14, %s3839_s6  ;;  %3063 = vmatprep.subr.bf16.mxu0 %v1205_v34 }
 0x1c0   : > { %v1194_v26 = vpop.permute.xlu0 %1193  ;;  %3064 = vmatpush1.bf16.msra.mxu0 %v1204_v28 }
 0x1c1   : > { %v1206_v50 = vsel %vm1199_vm9, %v1192_v20, %v1194_v26  ;;  %v4718_v36 = vpop.permute.xlu1 %1195 }
 0x1c2   : > { %v1207_v42 = vsel %vm1199_vm9, %v1194_v26, %v4718_v36  ;;  %1785 = vrot.lane.b32.xlu0 %v3560_v12, %s3830_s8 }
 0x1c3   : > { %1883 = vrot.lane.b32.xlu1 %v3560_v12, %s3831_s9  ;;  %3145 = vmatprep.subr.bf16.mxu1 %v1207_v42 }
 0x1c4   : > { %v1288_v13 = vpop.permute.xlu0 %1287  ;;  %3146 = vmatpush1.bf16.msra.mxu1 %v1206_v50 }
 0x1c5   : > { %v1302_v38 = vsel %vm1297_vm10, %v4218_v52, %v1288_v13  ;;  %v1290_v39 = vpop.permute.xlu1 %1289 }
 0x1c6   : > { %v1303_v40 = vsel %vm1297_vm10, %v1288_v13, %v1290_v39  ;;  %1197 = vrot.lane.b32.xlu0 %v3560_v12, %s3824_s27 }
 0x1c7   : > { %1981 = vrot.lane.b32.xlu1 %v3560_v12, %s3832_s10  ;;  %3065 = vmatprep.subr.bf16.mxu0 %v1303_v40 }
 0x1c8   : > { %v1292_v47 = vpop.permute.xlu0 %1291  ;;  %3066 = vmatpush1.bf16.msra.mxu0 %v1302_v38 }
 0x1c9   : > { %v1304_v59 = vsel %vm1297_vm10, %v1290_v39, %v1292_v47  ;;  %v4732_v11 = vpop.permute.xlu1 %1293 }
 0x1ca   : > { %v1305_v52 = vsel %vm1297_vm10, %v1292_v47, %v4732_v11  ;;  %1295 = vrot.lane.b32.xlu0 %v3560_v12, %s3825_s28 }
 0x1cb   : > { %2079 = vrot.lane.b32.xlu1 %v3560_v12, %s3833_s11  ;;  %3147 = vmatprep.subr.bf16.mxu1 %v1305_v52 }
 0x1cc   : > { %v1386_v21 = vpop.permute.xlu0 %1385  ;;  %3148 = vmatpush1.bf16.msra.mxu1 %v1304_v59 }
 0x1cd   : > { %v1400_v27 = vsel %vm1395_vm11, %v4235_v63, %v1386_v21  ;;  %v1388_v51 = vpop.permute.xlu1 %1387  ;;  %v2859_v63 = vld [vmem:[%s4936_s2] sm:$0xff] }
 0x1ce   : > { %v1401_v1 = vsel %vm1395_vm11, %v1386_v21, %v1388_v51  ;;  %1393 = vrot.lane.b32.xlu0 %v3560_v12, %s3826_s29 }
 0x1cf   : > { %1491 = vrot.lane.b32.xlu1 %v3560_v12, %s3827_s30  ;;  %3067 = vmatprep.subr.bf16.mxu0 %v1401_v1 }
 0x1d0   : > { %v1390_v53 = vpop.permute.xlu0 %1389  ;;  %3068 = vmatpush1.bf16.msra.mxu0 %v1400_v27 }
 0x1d1   : > { %v1402_v56 = vsel %vm1395_vm11, %v1388_v51, %v1390_v53  ;;  %v4744_v57 = vpop.permute.xlu1 %1391 }
 0x1d2   : > { %v1403_v9 = vsel %vm1395_vm11, %v1390_v53, %v4744_v57  ;;  %1589 = vrot.lane.b32.xlu0 %v3560_v12, %s3828_s4 }
 0x1d3   : > { %1687 = vrot.lane.b32.xlu1 %v3560_v12, %s3829_s7  ;;  %3149 = vmatprep.subr.bf16.mxu1 %v1403_v9 }
 0x1d4   : > { %v1484_v58 = vpop.permute.xlu0 %1483  ;;  %3150 = vmatpush1.bf16.msra.mxu1 %v1402_v56 }
 0x1d5   : > { %v1498_v32 = vsel %vm1493_vm13, %v4281_v16, %v1484_v58  ;;  %v1486_v60 = vpop.permute.xlu1 %1485 }
 0x1d6   : > { %v1499_v5 = vsel %vm1493_vm13, %v1484_v58, %v1486_v60  ;;  %2862 = vperm.xlu0 %3755, %v2859_v63  }
 0x1d7   : > { %3069 = vmatprep.subr.bf16.mxu0 %v1499_v5 }
 0x1d8   : > { %v1488_v7 = vpop.permute.xlu0 %1487  ;;  %3070 = vmatpush1.bf16.msra.mxu0 %v1498_v32 }
 0x1d9   : > { %v1500_v10 = vsel %vm1493_vm13, %v1486_v60, %v1488_v7  ;;  %v4757_v2 = vpop.permute.xlu1 %1489 }
 0x1da   : > { %v1501_v15 = vsel %vm1493_vm13, %v1488_v7, %v4757_v2 }
 0x1db   : > { %3151 = vmatprep.subr.bf16.mxu1 %v1501_v15 }
 0x1dc   : > { %v1582_v46 = vpop.permute.xlu0 %1581  ;;  %3152 = vmatpush1.bf16.msra.mxu1 %v1500_v10 }
 0x1dd   : > { %v1596_v16 = vsel %vm4947_vm0, %v4299_v29, %v1582_v46  ;;  %v1584_v18 = vpop.permute.xlu1 %1583  ;;  %vm4956_vm0 = vmmov %vm4955_vm8 }
 0x1de   : > { %v1597_v41 = vsel %vm4948_vm1, %v1582_v46, %v1584_v18  ;;  %vm4957_vm1 = vmmov %vm4956_vm0 }
 0x1df   : > { %3071 = vmatprep.subr.bf16.mxu0 %v1597_v41 }
 0x1e0   : > { %v1586_v33 = vpop.permute.xlu0 %1585  ;;  %3072 = vmatpush1.bf16.msra.mxu0 %v1596_v16 }
 0x1e1   : > { %v1598_v3 = vsel %vm4949_vm2, %v1584_v18, %v1586_v33  ;;  %v4765_v17 = vpop.permute.xlu1 %1587  ;;  %vm4958_vm2 = vmmov %vm4956_vm0 }
 0x1e2   : > { %v1599_v55 = vsel %vm4950_vm3, %v1586_v33, %v4765_v17  ;;  %vm4959_vm3 = vcmask 171008  }
 0x1e3   : > { %3153 = vmatprep.subr.bf16.mxu1 %v1599_v55 }
 0x1e4   : > { %v1680_v35 = vpop.permute.xlu0 %1679  ;;  %3154 = vmatpush1.bf16.msra.mxu1 %v1598_v3 }
 0x1e5   : > { %v1694_v22 = vsel %vm4951_vm4, %v4332_v48, %v1680_v35  ;;  %v1682_v29 = vpop.permute.xlu1 %1681  ;;  %vm4960_vm4 = vmmov %vm4959_vm3 }
 0x1e6   : > { %v1695_v23 = vsel %vm4952_vm5, %v1680_v35, %v1682_v29  ;;  %vm4961_vm5 = vmmov %vm4959_vm3 }
 0x1e7   : > { %3073 = vmatprep.subr.bf16.mxu0 %v1695_v23 }
 0x1e8   : > { %v1684_v31 = vpop.permute.xlu0 %1683  ;;  %3074 = vmatpush1.bf16.msra.mxu0 %v1694_v22 }
 0x1e9   : > { %v1696_v8 = vsel %vm4953_vm6, %v1682_v29, %v1684_v31  ;;  %v4773_v14 = vpop.permute.xlu1 %1685  ;;  %vm4962_vm6 = vmmov %vm4959_vm3 }
 0x1ea   : > { %v1697_v24 = vsel %vm4954_vm7, %v1684_v31, %v4773_v14  ;;  %vm4963_vm7 = vcmask 162816  }
 0x1eb   : > { %3155 = vmatprep.subr.bf16.mxu1 %v1697_v24  ;;  %3076 = vmatmul.mubr.bf16.vlgmr.msra.gmra.mrb[4].mxu0 %v4321_v45 }
 0x1ec   : > { %v1778_v28 = vpop.permute.xlu0 %1777  ;;  %3156 = vmatpush1.bf16.msra.mxu1 %v1696_v8  ;;  %3116 = vmatprep.mubr.bf16.mxu0 %v4336_v49 }
 0x1ed   : > { %v1792_v48 = vsel %vm4955_vm8, %v4354_v62, %v1778_v28  ;;  %v1780_v20 = vpop.permute.xlu1 %1779  ;;  %vm4964_vm8 = vmmov %vm4963_vm7 }
 0x1ee   : > { %v1793_v34 = vsel %vm4956_vm0, %v1778_v28, %v1780_v20  ;;  %vm4965_vm0 = vmmov %vm4963_vm7 }
 0x1ef   : > { %3084 = vmatprep.subr.bf16.mxu0 %v1793_v34  ;;  %3158 = vmatmul.mubr.bf16.vlgmr.msra.gmra.mrb[4].mxu1 %v4321_v45 }
 0x1f0   : > { %v1782_v12 = vpop.permute.xlu0 %1781  ;;  %3085 = vmatpush1.bf16.msra.mxu0 %v1792_v48  ;;  %3198 = vmatprep.mubr.bf16.mxu1 %v4336_v49 }
 0x1f1   : > { %v1794_v26 = vsel %vm4957_vm1, %v1780_v20, %v1782_v12  ;;  %v4785_v50 = vpop.permute.xlu1 %1783  ;;  %vm4966_vm1 = vmmov %vm4965_vm0 }
 0x1f2   : > { %v1795_v42 = vsel %vm4958_vm2, %v1782_v12, %v4785_v50  ;;  %vm4967_vm2 = vcmask 154624  }
 0x1f3   : > { %3166 = vmatprep.subr.bf16.mxu1 %v1795_v42 }
 0x1f4   : > { %v1876_v13 = vpop.permute.xlu0 %1875  ;;  %3167 = vmatpush1.bf16.msra.mxu1 %v1794_v26 }
 0x1f5   : > { %v1890_v62 = vsel %vm4959_vm3, %v4375_v19, %v1876_v13  ;;  %v1878_v38 = vpop.permute.xlu1 %1877  ;;  %vm4968_vm3 = vmmov %vm4967_vm2 }
 0x1f6   : > { %v1891_v39 = vsel %vm4960_vm4, %v1876_v13, %v1878_v38  ;;  %vm4969_vm4 = vmmov %vm4967_vm2 }
 0x1f7   : > { %3086 = vmatprep.subr.bf16.mxu0 %v1891_v39 }
 0x1f8   : > { %v1880_v40 = vpop.permute.xlu0 %1879  ;;  %3087 = vmatpush1.bf16.msra.mxu0 %v1890_v62 }
 0x1f9   : > { %v1892_v43 = vsel %vm4961_vm5, %v1878_v38, %v1880_v40  ;;  %v4793_v47 = vpop.permute.xlu1 %1881  ;;  %vm4970_vm5 = vmmov %vm4967_vm2 }
 0x1fa   : > { %v1893_v59 = vsel %vm4962_vm6, %v1880_v40, %v4793_v47  ;;  %vm4971_vm6 = vcmask 949248  }
 0x1fb   : > { %3168 = vmatprep.subr.bf16.mxu1 %v1893_v59 }
 0x1fc   : > { %v1974_v52 = vpop.permute.xlu0 %1973  ;;  %3169 = vmatpush1.bf16.msra.mxu1 %v1892_v43 }
 0x1fd   : > { %v1988_v21 = vsel %vm4963_vm7, %v4390_v37, %v1974_v52  ;;  %v1976_v19 = vpop.permute.xlu1 %1975  ;;  %vm4972_vm7 = vmmov %vm4971_vm6 }
 0x1fe   : > { %v1989_v27 = vsel %vm4964_vm8, %v1974_v52, %v1976_v19  ;;  %vm4973_vm8 = vmmov %vm4971_vm6 }
 0x1ff   : > { %3088 = vmatprep.subr.bf16.mxu0 %v1989_v27 }
 0x200   : > { %v1978_v51 = vpop.permute.xlu0 %1977  ;;  %3089 = vmatpush1.bf16.msra.mxu0 %v1988_v21 }
 0x201   : > { %v1990_v1 = vsel %vm4965_vm0, %v1976_v19, %v1978_v51  ;;  %v4801_v53 = vpop.permute.xlu1 %1979  ;;  %vm4974_vm0 = vmmov %vm4971_vm6 }
 0x202   : > { %v1991_v56 = vsel %vm4966_vm1, %v1978_v51, %v4801_v53  ;;  %vm4975_vm1 = vcmask 941056   ;;  %v4841_v51 = vld [vmem:[#allocation2 + $0x710] sm:$0xff] }
 0x203   : > { %3170 = vmatprep.subr.bf16.mxu1 %v1991_v56 }
 0x204   : > { %v2072_v9 = vpop.permute.xlu0 %2071  ;;  %3171 = vmatpush1.bf16.msra.mxu1 %v1990_v1 }
 0x205   : > { %v2086_v63 = vsel %vm4967_vm2, %v4408_v54, %v2072_v9  ;;  %v2074_v37 = vpop.permute.xlu1 %2073  ;;  %vm4976_vm2 = vmmov %vm4975_vm1 }
 0x206   : > { %v2087_v58 = vsel %vm4968_vm3, %v2072_v9, %v2074_v37  ;;  %vm4977_vm3 = vmmov %vm4975_vm1 }
 0x207   : > { %3090 = vmatprep.subr.bf16.mxu0 %v2087_v58 }
 0x208   : > { %v2076_v32 = vpop.permute.xlu0 %2075  ;;  %3091 = vmatpush1.bf16.msra.mxu0 %v2086_v63 }
 0x209   : > { %v2088_v60 = vsel %vm4969_vm4, %v2074_v37, %v2076_v32  ;;  %v4809_v5 = vpop.permute.xlu1 %2077  ;;  %vm4978_vm4 = vmmov %vm4975_vm1 }
 0x20a   : > { %v2089_v7 = vsel %vm4970_vm5, %v2076_v32, %v4809_v5  ;;  %vm4979_vm5 = vcmask 932864  }
 0x20b   : > { %3172 = vmatprep.subr.bf16.mxu1 %v2089_v7 }
 0x20c   : > { %v2167_v10 = vpop.permute.xlu0 %2166  ;;  %3173 = vmatpush1.bf16.msra.mxu1 %v2088_v60 }
 0x20d   : > { %v2179_v15 = vsel %vm4971_vm6, %v4423_v0, %v2167_v10  ;;  %v2169_v54 = vpop.permute.xlu1 %2168  ;;  %vm4980_vm6 = vmmov %vm4979_vm5 }
 0x20e   : > { %v2180_v46 = vsel %vm4972_vm7, %v2167_v10, %v2169_v54  ;;  %vm4981_vm7 = vmmov %vm4979_vm5 }
 0x20f   : > { %3092 = vmatprep.subr.bf16.mxu0 %v2180_v46  ;;  %v2579_v46 = vld [vmem:[#allocation2 + $0x40] sm:$0xff] }
 0x210   : > { %v2171_v16 = vpop.permute.xlu0 %2170  ;;  %3093 = vmatpush1.bf16.msra.mxu0 %v2179_v15 }
 0x211   : > { %v2181_v18 = vsel %vm4973_vm8, %v2169_v54, %v2171_v16  ;;  %v2173_v41 = vpop.permute.xlu1 %2172  ;;  %vm4982_vm8 = vmmov %vm4979_vm5 }
 0x212   : > { %v2182_v33 = vsel %vm4974_vm0, %v2171_v16, %v2173_v41  ;;  %2200 = vst.msk [vmem:[#allocation2 + $0x5e0] sm:$0xff] %vm180_vm12, %v2173_v41  ;;  %vm4984_vm0 = vcmask 171008   ;;  %v2588_v41 = vld [vmem:[#allocation2 + $0x88] sm:$0xff] }
 0x213   : > { %3174 = vmatprep.subr.bf16.mxu1 %v2182_v33 }
 0x214   : > { %v2259_v3 = vpop.permute.xlu0 %2258  ;;  %3175 = vmatpush1.bf16.msra.mxu1 %v2181_v18  ;;  %v2804_v18 = vld [vmem:[#allocation2 + $0x748] sm:$0xff] }
 0x215   : > { %v2271_v55 = vsel %vm4975_vm1, %v4445_v25, %v2259_v3  ;;  %v2261_v0 = vpop.permute.xlu1 %2260 }
 0x216   : > { %v2272_v35 = vsel %vm4976_vm2, %v2259_v3, %v2261_v0 }
 0x217   : > { %3094 = vmatprep.subr.bf16.mxu0 %v2272_v35 }
 0x218   : > { %v2263_v22 = vpop.permute.xlu0 %2262  ;;  %3095 = vmatpush1.bf16.msra.mxu0 %v2271_v55  ;;  %v2813_v55 = vld [vmem:[#allocation2 + $0x790] sm:$0xff] }
 0x219   : > { %v2273_v29 = vsel %vm4977_vm3, %v2261_v0, %v2263_v22  ;;  %v2265_v23 = vpop.permute.xlu1 %2264  ;;  %v2597_v0 = vld [vmem:[#allocation2 + $0xd0] sm:$0xff] }
 0x21a   : > { %v2274_v31 = vsel %vm4978_vm4, %v2263_v22, %v2265_v23  ;;  %2292 = vst.msk [vmem:[#allocation2 + $0x628] sm:$0xff] %vm180_vm12, %v2265_v23 }
 0x21b   : > { %3176 = vmatprep.subr.bf16.mxu1 %v2274_v31 }
 0x21c   : > { %v2351_v8 = vpop.permute.xlu0 %2350  ;;  %3177 = vmatpush1.bf16.msra.mxu1 %v2273_v29  ;;  %v2606_v29 = vld [vmem:[#allocation2 + $0x118] sm:$0xff] }
 0x21d   : > { %v2363_v24 = vsel %vm4979_vm5, %v4460_v44, %v2351_v8  ;;  %v2353_v25 = vpop.permute.xlu1 %2352 }
 0x21e   : > { %v2364_v28 = vsel %vm4980_vm6, %v2351_v8, %v2353_v25  ;;  %v2831_v8 = vld [vmem:[#allocation2 + $0x820] sm:$0xff] }
 0x21f   : > { %3096 = vmatprep.subr.bf16.mxu0 %v2364_v28 }
 0x220   : > { %v2355_v48 = vpop.permute.xlu0 %2354  ;;  %3097 = vmatpush1.bf16.msra.mxu0 %v2363_v24  ;;  %v2615_v24 = vld [vmem:[#allocation2 + $0x160] sm:$0xff] }
 0x221   : > { %v2365_v20 = vsel %vm4981_vm7, %v2353_v25, %v2355_v48  ;;  %v2357_v34 = vpop.permute.xlu1 %2356 }
 0x222   : > { %v2366_v12 = vsel %vm4982_vm8, %v2355_v48, %v2357_v34  ;;  %2384 = vst.msk [vmem:[#allocation2 + $0x670] sm:$0xff] %vm180_vm12, %v2357_v34 }
 0x223   : > { %3178 = vmatprep.subr.bf16.mxu1 %v2366_v12  ;;  %v2624_v12 = vld [vmem:[#allocation2 + $0x1a8] sm:$0xff] }
 0x224   : > { %v2443_v26 = vpop.permute.xlu0 %2442  ;;  %3179 = vmatpush1.bf16.msra.mxu1 %v2365_v20  ;;  %v2840_v20 = vld [vmem:[#allocation2 + $0x868] sm:$0xff] }
 0x225   : > { %v2455_v42 = vsel %vm2450_vm15, %v4479_v61, %v2443_v26  ;;  %v2445_v44 = vpop.permute.xlu1 %2444 }
 0x226   : > { %v2456_v13 = vsel %vm2450_vm15, %v2443_v26, %v2445_v44  ;;  %v2759_v26 = vld [vmem:[#allocation2 + $0x5e0] sm:$0xff] }
 0x227   : > { %3098 = vmatprep.subr.bf16.mxu0 %v2456_v13 }
 0x228   : > { %v2447_v62 = vpop.permute.xlu0 %2446  ;;  %3099 = vmatpush1.bf16.msra.mxu0 %v2455_v42 }
 0x229   : > { %v2457_v38 = vsel %vm2450_vm15, %v2445_v44, %v2447_v62  ;;  %v2449_v39 = vpop.permute.xlu1 %2448 }
 0x22a   : > { %v2458_v40 = vsel %vm2450_vm15, %v2447_v62, %v2449_v39  ;;  %2476 = vst.msk [vmem:[#allocation2 + $0x6b8] sm:$0xff] %vm180_vm12, %v2449_v39  ;;  %vm4983_vm15 = vcmask 179200  }
 0x22b   : > { %3180 = vmatprep.subr.bf16.mxu1 %v2458_v40 }
 0x22c   : > { %v2535_v43 = vpop.permute.xlu0 %2534  ;;  %3181 = vmatpush1.bf16.msra.mxu1 %v2457_v38 }
 0x22d   : > { %v2547_v59 = vsel %vm2542_vm14, %v4495_v4, %v2535_v43  ;;  %v2537_v61 = vpop.permute.xlu1 %2536 }
 0x22e   : > { %v2548_v52 = vsel %vm2542_vm14, %v2535_v43, %v2537_v61 }
 0x22f   : > { %3100 = vmatprep.subr.bf16.mxu0 %v2548_v52 }
 0x230   : > { %v2539_v21 = vpop.permute.xlu0 %2538  ;;  %3101 = vmatpush1.bf16.msra.mxu0 %v2547_v59  ;;  %v2849_v59 = vld [vmem:[#allocation2 + $0x8b0] sm:$0xff] }
 0x231   : > { %v2549_v19 = vsel %vm2542_vm14, %v2537_v61, %v2539_v21  ;;  %v2541_v27 = vpop.permute.xlu1 %2540  ;;  %3102 = vmatprep.subr.bf16.mxu0 %v4841_v51 }
 0x232   : > { %v2550_v1 = vsel %vm2542_vm14, %v2539_v21, %v2541_v27  ;;  %2568 = vst.msk [vmem:[#allocation2 + $0x700] sm:$0xff] %vm180_vm12, %v2541_v27  ;;  %vm4985_vm14 = vcmask 162816   ;;  %v2633_v21 = vld [vmem:[#allocation2 + $0x1f0] sm:$0xff] }
 0x233   : > { %3182 = vmatprep.subr.bf16.mxu1 %v2550_v1 }
 0x234   : > { %v1786_v56 = vpop.permute.xlu0 %1785  ;;  %3103 = vmatpush1.bf16.msra.mxu0 %v4841_v51  ;;  %3183 = vmatpush1.bf16.msra.mxu1 %v2549_v19  ;;  %v2768_v19 = vld [vmem:[#allocation2 + $0x628] sm:$0xff] }
 0x235   : > { %v1796_v4 = vsel %vm4983_vm15, %v4785_v50, %v1786_v56  ;;  %v1884_v9 = vpop.permute.xlu1 %1883  ;;  %3104 = vmatprep.subr.bf16.mxu0 %v4841_v51  ;;  %3184 = vmatprep.subr.bf16.mxu1 %v4841_v51 }
 0x236   : > { %1814 = vst.msk [vmem:[#allocation2 + $0x4c0] sm:$0xff] %vm180_vm12, %v1796_v4  ;;  %v1894_v63 = vsel %vm4984_vm0, %v4793_v47, %v1884_v9 }
 0x237   : > { %1912 = vst.msk [vmem:[#allocation2 + $0x508] sm:$0xff] %vm180_vm12, %v1894_v63 }
 0x238   : > { %v1198_v37 = vpop.permute.xlu0 %1197  ;;  %3105 = vmatpush1.bf16.msra.mxu0 %v4841_v51  ;;  %3185 = vmatpush1.bf16.msra.mxu1 %v4841_v51 }
 0x239   : > { %v1208_v50 = vsel %vm1199_vm9, %v4718_v36, %v1198_v37  ;;  %v1982_v58 = vpop.permute.xlu1 %1981  ;;  %3106 = vmatprep.subr.bf16.mxu0 %v4841_v51  ;;  %3186 = vmatprep.subr.bf16.mxu1 %v4841_v51  ;;  %vm4986_vm9 = vcmask 154624   ;;  %v2795_v16 = vld [vmem:[#allocation2 + $0x700] sm:$0xff]  ;;  %v2858_v37 = vld [vmem:[#allocation2 + $0x8f8] sm:$0xff] }
 0x23a   : > { %1226 = vst.msk [vmem:[#allocation2 + $0x310] sm:$0xff] %vm180_vm12, %v1208_v50  ;;  %v1992_v47 = vsel %vm4985_vm14, %v4801_v53, %v1982_v58  ;;  %v2642_v50 = vld [vmem:[#allocation2 + $0x238] sm:$0xff]  ;;  %v2777_v58 = vld [vmem:[#allocation2 + $0x670] sm:$0xff] }
 0x23b   : > { %2010 = vst.msk [vmem:[#allocation2 + $0x550] sm:$0xff] %vm180_vm12, %v1992_v47 }
 0x23c   : > { %v1296_v32 = vpop.permute.xlu0 %1295  ;;  %3107 = vmatpush1.bf16.msra.mxu0 %v4841_v51  ;;  %3187 = vmatpush1.bf16.msra.mxu1 %v4841_v51 }
 0x23d   : > { %v1306_v36 = vsel %vm1297_vm10, %v4732_v11, %v1296_v32  ;;  %v2080_v60 = vpop.permute.xlu1 %2079  ;;  %3108 = vmatprep.subr.bf16.mxu0 %v4841_v51  ;;  %3188 = vmatprep.subr.bf16.mxu1 %v4841_v51  ;;  %vm4987_vm10 = vcmask 441344   ;;  %v2723_v33 = vld [vmem:[#allocation2 + $0x4c0] sm:$0xff]  ;;  %v2786_v32 = vld [vmem:[#allocation2 + $0x6b8] sm:$0xff] }
 0x23e   : > { %1324 = vst.msk [vmem:[#allocation2 + $0x358] sm:$0xff] %vm180_vm12, %v1306_v36  ;;  %v2090_v53 = vsel %vm4986_vm9, %v4809_v5, %v2080_v60  ;;  %v2732_v35 = vld [vmem:[#allocation2 + $0x508] sm:$0xff] }
 0x23f   : > { %2108 = vst.msk [vmem:[#allocation2 + $0x598] sm:$0xff] %vm180_vm12, %v2090_v53 }
 0x240   : > { %v1394_v7 = vpop.permute.xlu0 %1393  ;;  %3109 = vmatpush1.bf16.msra.mxu0 %v4841_v51  ;;  %3189 = vmatpush1.bf16.msra.mxu1 %v4841_v51 }
 0x241   : > { %v1404_v11 = vsel %vm1395_vm11, %v4744_v57, %v1394_v7  ;;  %v1492_v10 = vpop.permute.xlu1 %1491  ;;  %3110 = vmatprep.subr.bf16.mxu0 %v4841_v51  ;;  %3190 = vmatprep.subr.bf16.mxu1 %v4841_v51  ;;  %vm4988_vm11 = vcmask 187392   ;;  %v2669_v3 = vld [vmem:[#allocation2 + $0x310] sm:$0xff] }
 0x242   : > { %1422 = vst.msk [vmem:[#allocation2 + $0x3a0] sm:$0xff] %vm180_vm12, %v1404_v11  ;;  %v1502_v5 = vsel %vm1493_vm13, %v4757_v2, %v1492_v10  ;;  %v2741_v23 = vld [vmem:[#allocation2 + $0x550] sm:$0xff] }
 0x243   : > { %1520 = vst.msk [vmem:[#allocation2 + $0x3e8] sm:$0xff] %vm180_vm12, %v1502_v5 }
 0x244   : > { %v1590_v15 = vpop.permute.xlu0 %1589  ;;  %3111 = vmatpush1.bf16.msra.mxu0 %v4841_v51  ;;  %3191 = vmatpush1.bf16.msra.mxu1 %v4841_v51 }
 0x245   : > { %v1600_v57 = vsel %vm4987_vm10, %v4765_v17, %v1590_v15  ;;  %v1688_v54 = vpop.permute.xlu1 %1687  ;;  %3112 = vmatprep.subr.bf16.mxu0 %v4841_v51  ;;  %3192 = vmatprep.subr.bf16.mxu1 %v4841_v51  ;;  %v2651_v17 = vld [vmem:[#allocation2 + $0x280] sm:$0xff]  ;;  %v2678_v22 = vld [vmem:[#allocation2 + $0x358] sm:$0xff] }
 0x246   : > { %1618 = vst.msk [vmem:[#allocation2 + $0x430] sm:$0xff] %vm180_vm12, %v1600_v57  ;;  %v1698_v2 = vsel %vm4988_vm11, %v4773_v14, %v1688_v54  ;;  %v2660_v14 = vld [vmem:[#allocation2 + $0x2c8] sm:$0xff]  ;;  %v2750_v25 = vld [vmem:[#allocation2 + $0x598] sm:$0xff] }
 0x247   : > { %1716 = vst.msk [vmem:[#allocation2 + $0x478] sm:$0xff] %vm180_vm12, %v1698_v2  ;;  %vm3337_vm12 = vcmask 494592  }
 0x248   : > { %3113 = vmatpush1.bf16.msra.mxu0 %v4841_v51  ;;  %3193 = vmatpush1.bf16.msra.mxu1 %v4841_v51 }
 0x249   : > { %3114 = vmatprep.subr.bf16.mxu0 %v4841_v51  ;;  %3194 = vmatprep.subr.bf16.mxu1 %v4841_v51  ;;  %v2687_v31 = vld [vmem:[#allocation2 + $0x3a0] sm:$0xff] }
 0x24c   : > { %3115 = vmatpush1.bf16.msra.mxu0 %v4841_v51  ;;  %3195 = vmatpush1.bf16.msra.mxu1 %v4841_v51 }
 0x24d   : > { %3652 = vmatprep.subr.bf16.mxu0 %v2651_v17  ;;  %3196 = vmatprep.subr.bf16.mxu1 %v4841_v51  ;;  %v2705_v62 = vld [vmem:[#allocation2 + $0x430] sm:$0xff] }
 0x24e   : > { %v2714_v56 = vld [vmem:[#allocation2 + $0x478] sm:$0xff] }
 0x24f   : > { %3117 = vmatmul.mubr.bf16.vlgmr.msra.gmra.mrb[4].mxu0 %v4590_v6 }
 0x250   : > { %3197 = vmatpush1.bf16.msra.mxu1 %v4841_v51  ;;  %3653 = vmatpush3.bf16.msra.mxu0 %v2579_v46 }
 0x251   : > { %3654 = vmatprep.subr.bf16.mxu0 %v2660_v14  ;;  %3674 = vmatprep.subr.bf16.mxu1 %v2795_v16 }
 0x252   : > { %3239 = vmatprep.mubr.bf16.mxu0 %v4058_v30  ;;  %v2822_v30 = vld [vmem:[#allocation2 + $0x7d8] sm:$0xff] }
 0x253   : > { %3199 = vmatmul.mubr.bf16.vlgmr.msra.gmra.mrb[4].mxu1 %v4590_v6 }
 0x254   : > { %3655 = vmatpush3.bf16.msra.mxu0 %v2588_v41  ;;  %3675 = vmatpush3.bf16.msra.mxu1 %v2723_v33 }
 0x255   : > { %3656 = vmatprep.subr.bf16.mxu0 %v2669_v3  ;;  %3676 = vmatprep.subr.bf16.mxu1 %v2804_v18  ;;  %v4907_v28 = vpop.permute.xlu0 %2862 }
 0x256   : > { %3279 = vmatprep.mubr.bf16.mxu1 %v4336_v49  ;;  %v2696_v49 = vld [vmem:[#allocation2 + $0x3e8] sm:$0xff] }
 0x258   : > { %3657 = vmatpush3.bf16.msra.mxu0 %v2597_v0  ;;  %3677 = vmatpush3.bf16.msra.mxu1 %v2732_v35 }
 0x259   : > { %3658 = vmatprep.subr.bf16.mxu0 %v2678_v22  ;;  %3678 = vmatprep.subr.bf16.mxu1 %v2813_v55 }
 0x25c   : > { %3659 = vmatpush3.bf16.msra.mxu0 %v2606_v29  ;;  %3679 = vmatpush3.bf16.msra.mxu1 %v2741_v23 }
 0x25d   : > { %3660 = vmatprep.subr.bf16.mxu0 %v2687_v31  ;;  %3680 = vmatprep.subr.bf16.mxu1 %v2822_v30 }
 0x260   : > { %3661 = vmatpush3.bf16.msra.mxu0 %v2615_v24  ;;  %3681 = vmatpush3.bf16.msra.mxu1 %v2750_v25 }
 0x261   : > { %3662 = vmatprep.subr.bf16.mxu0 %v2696_v49  ;;  %3682 = vmatprep.subr.bf16.mxu1 %v2831_v8 }
 0x262   : > { %v2954_v48 = vpop.f32.mrb[0].mxu0 }
 0x263   : > { %v2956_v34 = vpop.f32.mrb[1].mxu0  ;;  %v3696_v42 = vadd.f32 %v2954_v48, %v4907_v28 }
 0x264   : > { %v2958_v44 = vpop.f32.mrb[2].mxu0  ;;  %3663 = vmatpush3.bf16.msra.mxu0 %v2624_v12  ;;  %3683 = vmatpush3.bf16.msra.mxu1 %v2759_v26  ;;  %v3697_v13 = vadd.f32 %v2956_v34, %v4907_v28 }
 0x265   : > { %v3287_v38 = vmax.f32 %v3696_v42, 0.0  ;;  %v2959_v39 = vpop.f32.mrb[3].mxu0  ;;  %3664 = vmatprep.subr.bf16.mxu0 %v2705_v62  ;;  %3684 = vmatprep.subr.bf16.mxu1 %v2840_v20 }
 0x266   : > { %v3288_v40 = vmax.f32 %v3697_v13, 0.0  ;;  %v3036_v43 = vpop.f32.mrb[0].mxu1 }
 0x267   : > { %v3698_v61 = vadd.f32 %v3036_v43, %v4907_v28  ;;  %v3038_v52 = vpop.f32.mrb[1].mxu1 }
 0x268   : > { %v3699_v27 = vadd.f32 %v3038_v52, %v4907_v28  ;;  %v3647_v51 = vpack.c.bf16 %v3288_v40, %v3287_v38  ;;  %v3040_v1 = vpop.f32.mrb[2].mxu1  ;;  %3665 = vmatpush3.bf16.msra.mxu0 %v2633_v21  ;;  %3685 = vmatpush3.bf16.msra.mxu1 %v2768_v19 }
 0x269   : > { %v3289_v4 = vmax.f32 %v3698_v61, 0.0  ;;  %v3041_v9 = vpop.f32.mrb[3].mxu1  ;;  %3666 = vmatprep.subr.bf16.mxu0 %v2714_v56  ;;  %3686 = vmatprep.subr.bf16.mxu1 %v2849_v59 }
 0x26a   : > { %v3290_v63 = vmax.f32 %v3699_v27, 0.0  ;;  %3333 = vst [vmem:[%s4916_s24] sm:$0xff] %v3647_v51 }
 0x26c   : > { %v3648_v47 = vpack.c.bf16 %v3290_v63, %v3289_v4  ;;  %3667 = vmatpush3.bf16.msra.mxu0 %v2642_v50  ;;  %3687 = vmatpush3.bf16.msra.mxu1 %v2777_v58 }
 0x26d   : > { %3688 = vmatprep.subr.bf16.mxu1 %v2858_v37 }
 0x26e   : > { %3334 = vst [vmem:[%s4916_s24 + $0x8] sm:$0xff] %v3648_v47 }
 0x26f   : > { %3240 = vmatmul.mubr.bf16.vlgmr.msra.gmra.mrb[8].mxu0 %v4321_v45 }
 0x270   : > { %3689 = vmatpush3.bf16.msra.mxu1 %v2786_v32 }
 0x273   : > { %3280 = vmatmul.mubr.bf16.vlgmr.msra.gmra.mrb[8].mxu1 %v4590_v6 }
 0x322   : > { %v3118_v36 = vpop.f32.mrb[4].mxu0 }
 0x323   : > { %v3700_v60 = vadd.f32 %v3118_v36, %v4907_v28  ;;  %v3120_v53 = vpop.f32.mrb[5].mxu0 }
 0x324   : > { %v3701_v7 = vadd.f32 %v3120_v53, %v4907_v28  ;;  %v3122_v11 = vpop.f32.mrb[6].mxu0 }
 0x325   : > { %v3291_v10 = vmax.f32 %v3700_v60, 0.0  ;;  %v3123_v5 = vpop.f32.mrb[7].mxu0 }
 0x326   : > { %v3292_v15 = vmax.f32 %v3701_v7, 0.0  ;;  %v3200_v57 = vpop.f32.mrb[4].mxu1 }
 0x327   : > { %v3702_v54 = vadd.f32 %v3200_v57, %v4907_v28  ;;  %v3202_v45 = vpop.f32.mrb[5].mxu1 }
 0x328   : > { %v3649_v2 = vpack.c.bf16 %v3292_v15, %v3291_v10  ;;  %v3703_v17 = vadd.f32 %v3202_v45, %v4907_v28  ;;  %v3204_v6 = vpop.f32.mrb[6].mxu1 }
 0x329   : > { %v3293_v46 = vmax.f32 %v3702_v54, 0.0  ;;  %v3205_v14 = vpop.f32.mrb[7].mxu1 }
 0x32a   : > { %3335 = vst [vmem:[%s4916_s24 + $0x10] sm:$0xff] %v3649_v2  ;;  %v3294_v16 = vmax.f32 %v3703_v17, 0.0 }
 0x32c   : > { %v3650_v18 = vpack.c.bf16 %v3294_v16, %v3293_v46 }
 0x32e   : > { %3336 = vst [vmem:[%s4916_s24 + $0x18] sm:$0xff] %v3650_v18 }
 0x342   : > { %v3668_v41 = vpop.f32.mrb[8].mxu0 }
 0x343   : > { %v3669_v33 = vpop.f32.mrb[9].mxu0 }
 0x344   : > { %v3670_v3 = vadd.f32 %v3669_v33, %v3668_v41  ;;  %v3671_v55 = vpop.f32.mrb[10].mxu0 }
 0x345   : > { %v3672_v0 = vpop.f32.mrb[11].mxu0 }
 0x346   : > { %v3242_v35 = vadd.f32 %v3670_v3, %v4907_v28  ;;  %v3690_v22 = vpop.f32.mrb[8].mxu1 }
 0x347   : > { %v3691_v30 = vpop.f32.mrb[9].mxu1 }
 0x348   : > { %v3692_v29 = vadd.f32 %v3691_v30, %v3690_v22  ;;  %v3693_v23 = vpop.f32.mrb[10].mxu1 }
 0x349   : > { %v3694_v31 = vpop.f32.mrb[11].mxu1 }
 0x34a   : > { %v3282_v8 = vadd.f32 %v3692_v29, %v3242_v35 }
 0x34c   : > { %v3295_v24 = vmax.f32 %v3282_v8, 0.0 }
 0x34e   : > { %v3651_v25 = vpack.c.bf16 %v3295_v24, %v3295_v24 }
 0x350   : > { %3338 = vst.msk [vmem:[%s4916_s24 + $0x20] sm:$0xf] %vm3337_vm12, %v3651_v25 }
 0x351 PF: > { %s13_s12 = sadd.s32 1, %s3813_s12  }
 0x352   : > { %p10_p4 = scmp.ge.s32.totalorder %s13_s12, 4  }
 0x354   :  { %12 = sbr.rel (!%p10_p4) target bundleno = 1 (0x1), region = 62 }

</bundles_post_ra>
